<compile_context>
chip_gen: v5e
topology: v5e:2x2
jax: 0.10.0
libtpu: 0.0.40
codegen_flags: <defaults>
</compile_context>

<pallas_src>
import functools

import jax
import jax.numpy as jnp
from jax.experimental import pallas as pl
from jax.experimental.pallas import tpu as pltpu

_BN_EPS = 1e-5
_SUBLANE = 8  # f32 sublane tile


# ----------------------------------------------------------------------------
# In-kernel helpers
# ----------------------------------------------------------------------------
def _conv_bn(h, w, shift, ksz, pos, seq_len, relu):
    """SAME conv1d (stride 1) + folded BatchNorm (+ ReLU) on one (C, B*L) slab.

    h:     (C, B*L)       activation (batch folded into lanes, per-batch length seq_len).
    w:     (C_out, K*C)   conv weight with BN scale folded in, flattened tap-major.
    shift: (C_out, 1)     folded BN shift (includes the conv bias).
    pos:   (1, B*L) int32 position-within-batch of every lane.
    """
    c, bl = h.shape
    if ksz == 1:
        xs = h
    else:
        left = (ksz - 1) // 2          # TF-style SAME: the extra zero goes on the right
        taps = []
        for k in range(ksz):
            d = k - left               # tap offset: xs_k[:, t] = h[:, t + d] (same batch)
            if d == 0:
                taps.append(h)
            else:
                rolled = pltpu.roll(h, shift=(-d) % bl, axis=1)   # XLU rotate, in vregs
                src = pos + d
                valid = (src >= 0) & (src < seq_len)              # halo / batch boundary
                taps.append(jnp.where(valid, rolled, 0.0))
        xs = jnp.concatenate(taps, axis=0)                        # (K*C, B*L)
    # One deep-contraction MXU matmul per conv (contraction depth = K * C).
    y = jnp.dot(w, xs, preferred_element_type=jnp.float32) + shift
    return jnp.maximum(y, 0.0) if relu else y


def _fused_forward_kernel(x_ref, pos_ref, pool_ref, *rest, block_meta, seq_len):
    """Whole ResNetBaseline forward: 3 fused blocks + mean pool + final Linear."""
    o_ref = rest[-1]
    params = rest[:-1]
    pos = pos_ref[...]                                   # (1, B*L) int32

    idx = 0
    h = x_ref[...]                                       # (C0, B*L) f32
    for ks, has_res in block_meta:
        blk_in = h
        cur = blk_in
        for k in ks:                                     # 3 x (conv + BN + ReLU)
            w, s = params[idx][...], params[idx + 1][...]
            idx += 2
            cur = _conv_bn(cur, w, s, k, pos, seq_len, relu=True)
        if has_res:                                      # 1x1 conv + BN shortcut
            wr, sr = params[idx][...], params[idx + 1][...]
            idx += 2
            cur = cur + _conv_bn(blk_in, wr, sr, 1, pos, seq_len, relu=False)
        h = cur

    fw = params[idx][...]                                # (C_f, P) pre-transposed Linear
    fb = params[idx + 1][...]                            # (1, P)
    # Global average pool of all batches via one MXU matmul against the (B, B*L)
    # averaging matrix (contracting the lane axis), then one (B, C) @ (C, P) matmul.
    pooled = jax.lax.dot_general(pool_ref[...], h, (((1,), (1,)), ((), ())),
                                 preferred_element_type=jnp.float32)     # (B, C_f)
    logits = jnp.dot(pooled, fw, preferred_element_type=jnp.float32) + fb
    o_ref[...] = logits.astype(o_ref.dtype)              # single (B, P) store


# ----------------------------------------------------------------------------
# Forward wrapper: one pallas_call, no grid (everything fits in VMEM)
# ----------------------------------------------------------------------------
@functools.partial(jax.jit, static_argnames=("block_meta", "c_in_padded"))
def resnet_baseline_forward(x, params_flat, *, block_meta, c_in_padded):
    B, C_in, L = x.shape
    P = params_flat[-1].shape[-1]

    # Pad input channels to the sublane tile and fold batch into the lane axis: (C0, B*L).
    xp = jnp.pad(x, ((0, 0), (0, c_in_padded - C_in), (0, 0))) if c_in_padded > C_in else x
    x2d = jnp.transpose(xp, (1, 0, 2)).reshape(c_in_padded, B * L)

    t = jnp.arange(B * L, dtype=jnp.int32)
    pos = (t % L).reshape(1, B * L)                                   # lane -> pos in batch
    pool = ((t[None, :] // L) == jnp.arange(B, dtype=jnp.int32)[:, None])
    pool = pool.astype(jnp.float32) * (1.0 / L)                       # (B, B*L) averaging

    kern = functools.partial(_fused_forward_kernel, block_meta=block_meta, seq_len=L)
    return pl.pallas_call(
        kern,
        out_shape=jax.ShapeDtypeStruct((B, P), jnp.float32),
    )(x2d, pos, pool, *params_flat)


# ----------------------------------------------------------------------------
# Parameters (deterministic) + BN/weight folding
# ----------------------------------------------------------------------------
def make_convblock_params(key, c_in, c_out, ksz):
    kw, kb, kg, kbe, km, kv = jax.random.split(key, 6)
    w = 0.1 * jax.random.normal(kw, (c_out, c_in, ksz), jnp.float32)   # PyTorch OIH layout
    bias = 0.1 * jax.random.normal(kb, (c_out,), jnp.float32)
    gamma = 1.0 + 0.1 * jax.random.normal(kg, (c_out,), jnp.float32)
    beta = 0.1 * jax.random.normal(kbe, (c_out,), jnp.float32)
    r_mean = 0.1 * jax.random.normal(km, (c_out,), jnp.float32)
    r_var = jax.random.uniform(kv, (c_out,), jnp.float32, 0.5, 1.5)
    scale = gamma / jnp.sqrt(r_var + _BN_EPS)          # inference-mode BN fold
    shift = (bias - r_mean) * scale + beta
    return {"w": w, "scale": scale, "shift": shift, "k": ksz}


def make_resnet_block_params(key, c_in, c_out):
    channels = [c_in, c_out, c_out, c_out]
    kernel_sizes = [8, 5, 3]
    keys = jax.random.split(key, 4)
    convs = [make_convblock_params(keys[i], channels[i], channels[i + 1], kernel_sizes[i])
             for i in range(3)]
    residual = make_convblock_params(keys[3], c_in, c_out, 1) if c_in != c_out else None
    return {"convs": convs, "residual": residual}


def make_model_params(key, in_channels, mid_channels, num_pred_classes):
    k1, k2, k3, k4, k5 = jax.random.split(key, 5)
    blocks = [
        make_resnet_block_params(k1, in_channels, mid_channels),
        make_resnet_block_params(k2, mid_channels, mid_channels * 2),
        make_resnet_block_params(k3, mid_channels * 2, mid_channels * 2),
    ]
    final_w = 0.1 * jax.random.normal(k4, (num_pred_classes, mid_channels * 2), jnp.float32)
    final_b = 0.1 * jax.random.normal(k5, (1, num_pred_classes), jnp.float32)
    return {"blocks": blocks, "final_w": final_w, "final_b": final_b}


def _fold_conv(p, c_in_pad=None):
    """Fold BN scale into the conv weight (f32), optionally pad input channels with
    zeros, and flatten tap-major to (C_out, K*C_in)."""
    w, scale, shift = p["w"], p["scale"], p["shift"]
    c_out, c_in, ksz = w.shape
    w = w * scale[:, None, None]
    if c_in_pad is not None and c_in_pad > c_in:
        w = jnp.pad(w, ((0, 0), (0, c_in_pad - c_in), (0, 0)))
    wflat = jnp.transpose(w, (0, 2, 1)).reshape(c_out, -1)   # row k*C + i <-> tap k, chan i
    return wflat, shift.reshape(c_out, 1)


def prepare_model_params(raw, in_channels):
    """Flatten all folded weights into one kernel-argument tuple + static metadata."""
    c0 = ((max(in_channels, 1) + _SUBLANE - 1) // _SUBLANE) * _SUBLANE
    flat, meta = [], []
    for bi, blk in enumerate(raw["blocks"]):
        pad = c0 if bi == 0 else None
        ks = tuple(p["k"] for p in blk["convs"])
        has_res = blk["residual"] is not None
        for ci, p in enumerate(blk["convs"]):
            wf, sf = _fold_conv(p, pad if ci == 0 else None)
            flat += [wf, sf]
        if has_res:
            wf, sf = _fold_conv(blk["residual"], pad)
            flat += [wf, sf]
        meta.append((ks, has_res))
    flat += [raw["final_w"].T, raw["final_b"]]          # (C, P) pre-transposed, (1, P)
    return tuple(flat), tuple(meta), c0


# ----------------------------------------------------------------------------
# Pure-JAX reference for verification
# ----------------------------------------------------------------------------
def _ref_conv_bn(x, p, relu):
    w, scale, shift, K = p["w"], p["scale"], p["shift"], p["k"]
    left = (K - 1) // 2
    right = (K - 1) - left
    xp = jnp.pad(x, ((0, 0), (0, 0), (left, right)))
    y = jax.lax.conv_general_dilated(xp, w, window_strides=(1,), padding="VALID",
                                     dimension_numbers=("NCH", "OIH", "NCH"))
    y = y * scale[None, :, None] + shift[None, :, None]
    if relu:
        y = jnp.maximum(y, 0.0)
    return y


def _ref_forward(x, raw):
    h = x
    for blk in raw["blocks"]:
        res = _ref_conv_bn(h, blk["residual"], relu=False) if blk["residual"] is not None else None
        out = h
        for p in blk["convs"]:
            out = _ref_conv_bn(out, p, relu=True)
        h = out + res if res is not None else out
    pooled = jnp.mean(h, axis=-1)
    return pooled @ raw["final_w"].T + raw["final_b"]


# ----------------------------------------------------------------------------
if __name__ == "__main__":
    B, C_IN, L = 2, 4, 128          # L multiple of 128 -> lane-dense activation slabs
    MID, NUM_CLASSES = 8, 3

    key = jax.random.PRNGKey(0)
    k_x, k_p = jax.random.split(key)
    x = jax.random.normal(k_x, (B, C_IN, L), jnp.float32)

    raw_params = make_model_params(k_p, C_IN, MID, NUM_CLASSES)
    params_flat, block_meta, c0 = prepare_model_params(raw_params, C_IN)

    out = resnet_baseline_forward(x, params_flat, block_meta=block_meta, c_in_padded=c0)
    out = jax.block_until_ready(out)

    ref = _ref_forward(x, raw_params)
    assert out.shape == (B, NUM_CLASSES)
    assert jnp.allclose(out, ref, atol=2e-4, rtol=2e-4), (out, ref)

    print("KERNEL_OK")
</pallas_src>

<mosaic_0001>
module attributes {stable_mosaic.version = 11 : i64} {
  func.func @_fused_forward_kernel(%arg0: memref<8x256xf32, #tpu.memory_space<vmem>>, %arg1: memref<1x256xi32, #tpu.memory_space<vmem>>, %arg2: memref<2x256xf32, #tpu.memory_space<vmem>>, %arg3: memref<8x64xf32, #tpu.memory_space<vmem>>, %arg4: memref<8x1xf32, #tpu.memory_space<vmem>>, %arg5: memref<8x40xf32, #tpu.memory_space<vmem>>, %arg6: memref<8x1xf32, #tpu.memory_space<vmem>>, %arg7: memref<8x24xf32, #tpu.memory_space<vmem>>, %arg8: memref<8x1xf32, #tpu.memory_space<vmem>>, %arg9: memref<8x8xf32, #tpu.memory_space<vmem>>, %arg10: memref<8x1xf32, #tpu.memory_space<vmem>>, %arg11: memref<16x64xf32, #tpu.memory_space<vmem>>, %arg12: memref<16x1xf32, #tpu.memory_space<vmem>>, %arg13: memref<16x80xf32, #tpu.memory_space<vmem>>, %arg14: memref<16x1xf32, #tpu.memory_space<vmem>>, %arg15: memref<16x48xf32, #tpu.memory_space<vmem>>, %arg16: memref<16x1xf32, #tpu.memory_space<vmem>>, %arg17: memref<16x8xf32, #tpu.memory_space<vmem>>, %arg18: memref<16x1xf32, #tpu.memory_space<vmem>>, %arg19: memref<16x128xf32, #tpu.memory_space<vmem>>, %arg20: memref<16x1xf32, #tpu.memory_space<vmem>>, %arg21: memref<16x80xf32, #tpu.memory_space<vmem>>, %arg22: memref<16x1xf32, #tpu.memory_space<vmem>>, %arg23: memref<16x48xf32, #tpu.memory_space<vmem>>, %arg24: memref<16x1xf32, #tpu.memory_space<vmem>>, %arg25: memref<16x3xf32, #tpu.memory_space<vmem>>, %arg26: memref<1x3xf32, #tpu.memory_space<vmem>>, %arg27: memref<2x3xf32, #tpu.memory_space<vmem>>) attributes {dimension_semantics = [], scalar_prefetch = 0 : i64, scratch_operands = 0 : i64, tpu.core_type = #tpu.core_type<tc>} {
    %c0 = arith.constant 0 : index
    %c0_0 = arith.constant 0 : index
    %0 = vector.load %arg1[%c0, %c0_0] : memref<1x256xi32, #tpu.memory_space<vmem>>, vector<1x256xi32>
    %c0_1 = arith.constant 0 : index
    %c0_2 = arith.constant 0 : index
    %1 = vector.load %arg0[%c0_1, %c0_2] : memref<8x256xf32, #tpu.memory_space<vmem>>, vector<8x256xf32>
    %c0_3 = arith.constant 0 : index
    %c0_4 = arith.constant 0 : index
    %2 = vector.load %arg3[%c0_3, %c0_4] : memref<8x64xf32, #tpu.memory_space<vmem>>, vector<8x64xf32>
    %c0_5 = arith.constant 0 : index
    %c0_6 = arith.constant 0 : index
    %3 = vector.load %arg4[%c0_5, %c0_6] : memref<8x1xf32, #tpu.memory_space<vmem>>, vector<8x1xf32>
    %c3_i32 = arith.constant 3 : i32
    %4 = tpu.dynamic_rotate %1 by %c3_i32 dim 1 : vector<8x256xf32>, i32 -> vector<8x256xf32>
    %c-3_i32 = arith.constant -3 : i32
    %5 = vector.broadcast %c-3_i32 : i32 to vector<1x256xi32>
    %6 = arith.addi %0, %5 : vector<1x256xi32>
    %c0_i32 = arith.constant 0 : i32
    %7 = vector.broadcast %c0_i32 : i32 to vector<1x256xi32>
    %8 = arith.cmpi sge, %6, %7 : vector<1x256xi32>
    %c128_i32 = arith.constant 128 : i32
    %9 = vector.broadcast %c128_i32 : i32 to vector<1x256xi32>
    %10 = arith.cmpi slt, %6, %9 : vector<1x256xi32>
    %11 = arith.andi %8, %10 : vector<1x256xi1>
    %cst = arith.constant 0.000000e+00 : f32
    %12 = vector.shape_cast %11 : vector<1x256xi1> to vector<1x256xi1>
    %13 = vector.broadcast %12 : vector<1x256xi1> to vector<8x256xi1>
    %14 = vector.broadcast %cst : f32 to vector<8x256xf32>
    %15 = arith.select %13, %4, %14 : vector<8x256xi1>, vector<8x256xf32>
    %c2_i32 = arith.constant 2 : i32
    %16 = tpu.dynamic_rotate %1 by %c2_i32 dim 1 : vector<8x256xf32>, i32 -> vector<8x256xf32>
    %c-2_i32 = arith.constant -2 : i32
    %17 = vector.broadcast %c-2_i32 : i32 to vector<1x256xi32>
    %18 = arith.addi %0, %17 : vector<1x256xi32>
    %c0_i32_7 = arith.constant 0 : i32
    %19 = vector.broadcast %c0_i32_7 : i32 to vector<1x256xi32>
    %20 = arith.cmpi sge, %18, %19 : vector<1x256xi32>
    %c128_i32_8 = arith.constant 128 : i32
    %21 = vector.broadcast %c128_i32_8 : i32 to vector<1x256xi32>
    %22 = arith.cmpi slt, %18, %21 : vector<1x256xi32>
    %23 = arith.andi %20, %22 : vector<1x256xi1>
    %cst_9 = arith.constant 0.000000e+00 : f32
    %24 = vector.shape_cast %23 : vector<1x256xi1> to vector<1x256xi1>
    %25 = vector.broadcast %24 : vector<1x256xi1> to vector<8x256xi1>
    %26 = vector.broadcast %cst_9 : f32 to vector<8x256xf32>
    %27 = arith.select %25, %16, %26 : vector<8x256xi1>, vector<8x256xf32>
    %c1_i32 = arith.constant 1 : i32
    %28 = tpu.dynamic_rotate %1 by %c1_i32 dim 1 : vector<8x256xf32>, i32 -> vector<8x256xf32>
    %c-1_i32 = arith.constant -1 : i32
    %29 = vector.broadcast %c-1_i32 : i32 to vector<1x256xi32>
    %30 = arith.addi %0, %29 : vector<1x256xi32>
    %c0_i32_10 = arith.constant 0 : i32
    %31 = vector.broadcast %c0_i32_10 : i32 to vector<1x256xi32>
    %32 = arith.cmpi sge, %30, %31 : vector<1x256xi32>
    %c128_i32_11 = arith.constant 128 : i32
    %33 = vector.broadcast %c128_i32_11 : i32 to vector<1x256xi32>
    %34 = arith.cmpi slt, %30, %33 : vector<1x256xi32>
    %35 = arith.andi %32, %34 : vector<1x256xi1>
    %cst_12 = arith.constant 0.000000e+00 : f32
    %36 = vector.shape_cast %35 : vector<1x256xi1> to vector<1x256xi1>
    %37 = vector.broadcast %36 : vector<1x256xi1> to vector<8x256xi1>
    %38 = vector.broadcast %cst_12 : f32 to vector<8x256xf32>
    %39 = arith.select %37, %28, %38 : vector<8x256xi1>, vector<8x256xf32>
    %c255_i32 = arith.constant 255 : i32
    %40 = tpu.dynamic_rotate %1 by %c255_i32 dim 1 : vector<8x256xf32>, i32 -> vector<8x256xf32>
    %c1_i32_13 = arith.constant 1 : i32
    %41 = vector.broadcast %c1_i32_13 : i32 to vector<1x256xi32>
    %42 = arith.addi %0, %41 : vector<1x256xi32>
    %c0_i32_14 = arith.constant 0 : i32
    %43 = vector.broadcast %c0_i32_14 : i32 to vector<1x256xi32>
    %44 = arith.cmpi sge, %42, %43 : vector<1x256xi32>
    %c128_i32_15 = arith.constant 128 : i32
    %45 = vector.broadcast %c128_i32_15 : i32 to vector<1x256xi32>
    %46 = arith.cmpi slt, %42, %45 : vector<1x256xi32>
    %47 = arith.andi %44, %46 : vector<1x256xi1>
    %cst_16 = arith.constant 0.000000e+00 : f32
    %48 = vector.shape_cast %47 : vector<1x256xi1> to vector<1x256xi1>
    %49 = vector.broadcast %48 : vector<1x256xi1> to vector<8x256xi1>
    %50 = vector.broadcast %cst_16 : f32 to vector<8x256xf32>
    %51 = arith.select %49, %40, %50 : vector<8x256xi1>, vector<8x256xf32>
    %c254_i32 = arith.constant 254 : i32
    %52 = tpu.dynamic_rotate %1 by %c254_i32 dim 1 : vector<8x256xf32>, i32 -> vector<8x256xf32>
    %c2_i32_17 = arith.constant 2 : i32
    %53 = vector.broadcast %c2_i32_17 : i32 to vector<1x256xi32>
    %54 = arith.addi %0, %53 : vector<1x256xi32>
    %c0_i32_18 = arith.constant 0 : i32
    %55 = vector.broadcast %c0_i32_18 : i32 to vector<1x256xi32>
    %56 = arith.cmpi sge, %54, %55 : vector<1x256xi32>
    %c128_i32_19 = arith.constant 128 : i32
    %57 = vector.broadcast %c128_i32_19 : i32 to vector<1x256xi32>
    %58 = arith.cmpi slt, %54, %57 : vector<1x256xi32>
    %59 = arith.andi %56, %58 : vector<1x256xi1>
    %cst_20 = arith.constant 0.000000e+00 : f32
    %60 = vector.shape_cast %59 : vector<1x256xi1> to vector<1x256xi1>
    %61 = vector.broadcast %60 : vector<1x256xi1> to vector<8x256xi1>
    %62 = vector.broadcast %cst_20 : f32 to vector<8x256xf32>
    %63 = arith.select %61, %52, %62 : vector<8x256xi1>, vector<8x256xf32>
    %c253_i32 = arith.constant 253 : i32
    %64 = tpu.dynamic_rotate %1 by %c253_i32 dim 1 : vector<8x256xf32>, i32 -> vector<8x256xf32>
    %c3_i32_21 = arith.constant 3 : i32
    %65 = vector.broadcast %c3_i32_21 : i32 to vector<1x256xi32>
    %66 = arith.addi %0, %65 : vector<1x256xi32>
    %c0_i32_22 = arith.constant 0 : i32
    %67 = vector.broadcast %c0_i32_22 : i32 to vector<1x256xi32>
    %68 = arith.cmpi sge, %66, %67 : vector<1x256xi32>
    %c128_i32_23 = arith.constant 128 : i32
    %69 = vector.broadcast %c128_i32_23 : i32 to vector<1x256xi32>
    %70 = arith.cmpi slt, %66, %69 : vector<1x256xi32>
    %71 = arith.andi %68, %70 : vector<1x256xi1>
    %cst_24 = arith.constant 0.000000e+00 : f32
    %72 = vector.shape_cast %71 : vector<1x256xi1> to vector<1x256xi1>
    %73 = vector.broadcast %72 : vector<1x256xi1> to vector<8x256xi1>
    %74 = vector.broadcast %cst_24 : f32 to vector<8x256xf32>
    %75 = arith.select %73, %64, %74 : vector<8x256xi1>, vector<8x256xf32>
    %c252_i32 = arith.constant 252 : i32
    %76 = tpu.dynamic_rotate %1 by %c252_i32 dim 1 : vector<8x256xf32>, i32 -> vector<8x256xf32>
    %c4_i32 = arith.constant 4 : i32
    %77 = vector.broadcast %c4_i32 : i32 to vector<1x256xi32>
    %78 = arith.addi %0, %77 : vector<1x256xi32>
    %c0_i32_25 = arith.constant 0 : i32
    %79 = vector.broadcast %c0_i32_25 : i32 to vector<1x256xi32>
    %80 = arith.cmpi sge, %78, %79 : vector<1x256xi32>
    %c128_i32_26 = arith.constant 128 : i32
    %81 = vector.broadcast %c128_i32_26 : i32 to vector<1x256xi32>
    %82 = arith.cmpi slt, %78, %81 : vector<1x256xi32>
    %83 = arith.andi %80, %82 : vector<1x256xi1>
    %cst_27 = arith.constant 0.000000e+00 : f32
    %84 = vector.shape_cast %83 : vector<1x256xi1> to vector<1x256xi1>
    %85 = vector.broadcast %84 : vector<1x256xi1> to vector<8x256xi1>
    %86 = vector.broadcast %cst_27 : f32 to vector<8x256xf32>
    %87 = arith.select %85, %76, %86 : vector<8x256xi1>, vector<8x256xf32>
    %88 = tpu.concatenate %15, %27, %39, %1, %51, %63, %75, %87 in 0 : vector<8x256xf32>, vector<8x256xf32>, vector<8x256xf32>, vector<8x256xf32>, vector<8x256xf32>, vector<8x256xf32>, vector<8x256xf32>, vector<8x256xf32> -> vector<64x256xf32>
    %cst_28 = arith.constant dense<0.000000e+00> : vector<8x256xf32>
    %89 = tpu.matmul %2, %88, %cst_28 {dimension_numbers = #tpu.dot_dimension_numbers<[1], [0], [0], [1], [0, 0, 1, 1], [], []>} : vector<8x64xf32>, vector<64x256xf32>, vector<8x256xf32> -> vector<8x256xf32>
    %90 = vector.broadcast %3 : vector<8x1xf32> to vector<8x256xf32>
    %91 = arith.addf %89, %90 : vector<8x256xf32>
    %cst_29 = arith.constant 0.000000e+00 : f32
    %92 = vector.broadcast %cst_29 : f32 to vector<8x256xf32>
    %93 = arith.maximumf %91, %92 : vector<8x256xf32>
    %c0_30 = arith.constant 0 : index
    %c0_31 = arith.constant 0 : index
    %94 = vector.load %arg5[%c0_30, %c0_31] : memref<8x40xf32, #tpu.memory_space<vmem>>, vector<8x40xf32>
    %c0_32 = arith.constant 0 : index
    %c0_33 = arith.constant 0 : index
    %95 = vector.load %arg6[%c0_32, %c0_33] : memref<8x1xf32, #tpu.memory_space<vmem>>, vector<8x1xf32>
    %c2_i32_34 = arith.constant 2 : i32
    %96 = tpu.dynamic_rotate %93 by %c2_i32_34 dim 1 : vector<8x256xf32>, i32 -> vector<8x256xf32>
    %c-2_i32_35 = arith.constant -2 : i32
    %97 = vector.broadcast %c-2_i32_35 : i32 to vector<1x256xi32>
    %98 = arith.addi %0, %97 : vector<1x256xi32>
    %c0_i32_36 = arith.constant 0 : i32
    %99 = vector.broadcast %c0_i32_36 : i32 to vector<1x256xi32>
    %100 = arith.cmpi sge, %98, %99 : vector<1x256xi32>
    %c128_i32_37 = arith.constant 128 : i32
    %101 = vector.broadcast %c128_i32_37 : i32 to vector<1x256xi32>
    %102 = arith.cmpi slt, %98, %101 : vector<1x256xi32>
    %103 = arith.andi %100, %102 : vector<1x256xi1>
    %cst_38 = arith.constant 0.000000e+00 : f32
    %104 = vector.shape_cast %103 : vector<1x256xi1> to vector<1x256xi1>
    %105 = vector.broadcast %104 : vector<1x256xi1> to vector<8x256xi1>
    %106 = vector.broadcast %cst_38 : f32 to vector<8x256xf32>
    %107 = arith.select %105, %96, %106 : vector<8x256xi1>, vector<8x256xf32>
    %c1_i32_39 = arith.constant 1 : i32
    %108 = tpu.dynamic_rotate %93 by %c1_i32_39 dim 1 : vector<8x256xf32>, i32 -> vector<8x256xf32>
    %c-1_i32_40 = arith.constant -1 : i32
    %109 = vector.broadcast %c-1_i32_40 : i32 to vector<1x256xi32>
    %110 = arith.addi %0, %109 : vector<1x256xi32>
    %c0_i32_41 = arith.constant 0 : i32
    %111 = vector.broadcast %c0_i32_41 : i32 to vector<1x256xi32>
    %112 = arith.cmpi sge, %110, %111 : vector<1x256xi32>
    %c128_i32_42 = arith.constant 128 : i32
    %113 = vector.broadcast %c128_i32_42 : i32 to vector<1x256xi32>
    %114 = arith.cmpi slt, %110, %113 : vector<1x256xi32>
    %115 = arith.andi %112, %114 : vector<1x256xi1>
    %cst_43 = arith.constant 0.000000e+00 : f32
    %116 = vector.shape_cast %115 : vector<1x256xi1> to vector<1x256xi1>
    %117 = vector.broadcast %116 : vector<1x256xi1> to vector<8x256xi1>
    %118 = vector.broadcast %cst_43 : f32 to vector<8x256xf32>
    %119 = arith.select %117, %108, %118 : vector<8x256xi1>, vector<8x256xf32>
    %c255_i32_44 = arith.constant 255 : i32
    %120 = tpu.dynamic_rotate %93 by %c255_i32_44 dim 1 : vector<8x256xf32>, i32 -> vector<8x256xf32>
    %c1_i32_45 = arith.constant 1 : i32
    %121 = vector.broadcast %c1_i32_45 : i32 to vector<1x256xi32>
    %122 = arith.addi %0, %121 : vector<1x256xi32>
    %c0_i32_46 = arith.constant 0 : i32
    %123 = vector.broadcast %c0_i32_46 : i32 to vector<1x256xi32>
    %124 = arith.cmpi sge, %122, %123 : vector<1x256xi32>
    %c128_i32_47 = arith.constant 128 : i32
    %125 = vector.broadcast %c128_i32_47 : i32 to vector<1x256xi32>
    %126 = arith.cmpi slt, %122, %125 : vector<1x256xi32>
    %127 = arith.andi %124, %126 : vector<1x256xi1>
    %cst_48 = arith.constant 0.000000e+00 : f32
    %128 = vector.shape_cast %127 : vector<1x256xi1> to vector<1x256xi1>
    %129 = vector.broadcast %128 : vector<1x256xi1> to vector<8x256xi1>
    %130 = vector.broadcast %cst_48 : f32 to vector<8x256xf32>
    %131 = arith.select %129, %120, %130 : vector<8x256xi1>, vector<8x256xf32>
    %c254_i32_49 = arith.constant 254 : i32
    %132 = tpu.dynamic_rotate %93 by %c254_i32_49 dim 1 : vector<8x256xf32>, i32 -> vector<8x256xf32>
    %c2_i32_50 = arith.constant 2 : i32
    %133 = vector.broadcast %c2_i32_50 : i32 to vector<1x256xi32>
    %134 = arith.addi %0, %133 : vector<1x256xi32>
    %c0_i32_51 = arith.constant 0 : i32
    %135 = vector.broadcast %c0_i32_51 : i32 to vector<1x256xi32>
    %136 = arith.cmpi sge, %134, %135 : vector<1x256xi32>
    %c128_i32_52 = arith.constant 128 : i32
    %137 = vector.broadcast %c128_i32_52 : i32 to vector<1x256xi32>
    %138 = arith.cmpi slt, %134, %137 : vector<1x256xi32>
    %139 = arith.andi %136, %138 : vector<1x256xi1>
    %cst_53 = arith.constant 0.000000e+00 : f32
    %140 = vector.shape_cast %139 : vector<1x256xi1> to vector<1x256xi1>
    %141 = vector.broadcast %140 : vector<1x256xi1> to vector<8x256xi1>
    %142 = vector.broadcast %cst_53 : f32 to vector<8x256xf32>
    %143 = arith.select %141, %132, %142 : vector<8x256xi1>, vector<8x256xf32>
    %144 = tpu.concatenate %107, %119, %93, %131, %143 in 0 : vector<8x256xf32>, vector<8x256xf32>, vector<8x256xf32>, vector<8x256xf32>, vector<8x256xf32> -> vector<40x256xf32>
    %cst_54 = arith.constant dense<0.000000e+00> : vector<8x256xf32>
    %145 = tpu.matmul %94, %144, %cst_54 {dimension_numbers = #tpu.dot_dimension_numbers<[1], [0], [0], [1], [0, 0, 1, 1], [], []>} : vector<8x40xf32>, vector<40x256xf32>, vector<8x256xf32> -> vector<8x256xf32>
    %146 = vector.broadcast %95 : vector<8x1xf32> to vector<8x256xf32>
    %147 = arith.addf %145, %146 : vector<8x256xf32>
    %cst_55 = arith.constant 0.000000e+00 : f32
    %148 = vector.broadcast %cst_55 : f32 to vector<8x256xf32>
    %149 = arith.maximumf %147, %148 : vector<8x256xf32>
    %c0_56 = arith.constant 0 : index
    %c0_57 = arith.constant 0 : index
    %150 = vector.load %arg7[%c0_56, %c0_57] : memref<8x24xf32, #tpu.memory_space<vmem>>, vector<8x24xf32>
    %c0_58 = arith.constant 0 : index
    %c0_59 = arith.constant 0 : index
    %151 = vector.load %arg8[%c0_58, %c0_59] : memref<8x1xf32, #tpu.memory_space<vmem>>, vector<8x1xf32>
    %c1_i32_60 = arith.constant 1 : i32
    %152 = tpu.dynamic_rotate %149 by %c1_i32_60 dim 1 : vector<8x256xf32>, i32 -> vector<8x256xf32>
    %c-1_i32_61 = arith.constant -1 : i32
    %153 = vector.broadcast %c-1_i32_61 : i32 to vector<1x256xi32>
    %154 = arith.addi %0, %153 : vector<1x256xi32>
    %c0_i32_62 = arith.constant 0 : i32
    %155 = vector.broadcast %c0_i32_62 : i32 to vector<1x256xi32>
    %156 = arith.cmpi sge, %154, %155 : vector<1x256xi32>
    %c128_i32_63 = arith.constant 128 : i32
    %157 = vector.broadcast %c128_i32_63 : i32 to vector<1x256xi32>
    %158 = arith.cmpi slt, %154, %157 : vector<1x256xi32>
    %159 = arith.andi %156, %158 : vector<1x256xi1>
    %cst_64 = arith.constant 0.000000e+00 : f32
    %160 = vector.shape_cast %159 : vector<1x256xi1> to vector<1x256xi1>
    %161 = vector.broadcast %160 : vector<1x256xi1> to vector<8x256xi1>
    %162 = vector.broadcast %cst_64 : f32 to vector<8x256xf32>
    %163 = arith.select %161, %152, %162 : vector<8x256xi1>, vector<8x256xf32>
    %c255_i32_65 = arith.constant 255 : i32
    %164 = tpu.dynamic_rotate %149 by %c255_i32_65 dim 1 : vector<8x256xf32>, i32 -> vector<8x256xf32>
    %c1_i32_66 = arith.constant 1 : i32
    %165 = vector.broadcast %c1_i32_66 : i32 to vector<1x256xi32>
    %166 = arith.addi %0, %165 : vector<1x256xi32>
    %c0_i32_67 = arith.constant 0 : i32
    %167 = vector.broadcast %c0_i32_67 : i32 to vector<1x256xi32>
    %168 = arith.cmpi sge, %166, %167 : vector<1x256xi32>
    %c128_i32_68 = arith.constant 128 : i32
    %169 = vector.broadcast %c128_i32_68 : i32 to vector<1x256xi32>
    %170 = arith.cmpi slt, %166, %169 : vector<1x256xi32>
    %171 = arith.andi %168, %170 : vector<1x256xi1>
    %cst_69 = arith.constant 0.000000e+00 : f32
    %172 = vector.shape_cast %171 : vector<1x256xi1> to vector<1x256xi1>
    %173 = vector.broadcast %172 : vector<1x256xi1> to vector<8x256xi1>
    %174 = vector.broadcast %cst_69 : f32 to vector<8x256xf32>
    %175 = arith.select %173, %164, %174 : vector<8x256xi1>, vector<8x256xf32>
    %176 = tpu.concatenate %163, %149, %175 in 0 : vector<8x256xf32>, vector<8x256xf32>, vector<8x256xf32> -> vector<24x256xf32>
    %cst_70 = arith.constant dense<0.000000e+00> : vector<8x256xf32>
    %177 = tpu.matmul %150, %176, %cst_70 {dimension_numbers = #tpu.dot_dimension_numbers<[1], [0], [0], [1], [0, 0, 1, 1], [], []>} : vector<8x24xf32>, vector<24x256xf32>, vector<8x256xf32> -> vector<8x256xf32>
    %178 = vector.broadcast %151 : vector<8x1xf32> to vector<8x256xf32>
    %179 = arith.addf %177, %178 : vector<8x256xf32>
    %cst_71 = arith.constant 0.000000e+00 : f32
    %180 = vector.broadcast %cst_71 : f32 to vector<8x256xf32>
    %181 = arith.maximumf %179, %180 : vector<8x256xf32>
    %c0_72 = arith.constant 0 : index
    %c0_73 = arith.constant 0 : index
    %182 = vector.load %arg9[%c0_72, %c0_73] : memref<8x8xf32, #tpu.memory_space<vmem>>, vector<8x8xf32>
    %c0_74 = arith.constant 0 : index
    %c0_75 = arith.constant 0 : index
    %183 = vector.load %arg10[%c0_74, %c0_75] : memref<8x1xf32, #tpu.memory_space<vmem>>, vector<8x1xf32>
    %cst_76 = arith.constant dense<0.000000e+00> : vector<8x256xf32>
    %184 = tpu.matmul %182, %1, %cst_76 {dimension_numbers = #tpu.dot_dimension_numbers<[1], [0], [0], [1], [0, 0, 1, 1], [], []>} : vector<8x8xf32>, vector<8x256xf32>, vector<8x256xf32> -> vector<8x256xf32>
    %185 = vector.broadcast %183 : vector<8x1xf32> to vector<8x256xf32>
    %186 = arith.addf %184, %185 : vector<8x256xf32>
    %187 = arith.addf %181, %186 : vector<8x256xf32>
    %c0_77 = arith.constant 0 : index
    %c0_78 = arith.constant 0 : index
    %188 = vector.load %arg11[%c0_77, %c0_78] : memref<16x64xf32, #tpu.memory_space<vmem>>, vector<16x64xf32>
    %c0_79 = arith.constant 0 : index
    %c0_80 = arith.constant 0 : index
    %189 = vector.load %arg12[%c0_79, %c0_80] : memref<16x1xf32, #tpu.memory_space<vmem>>, vector<16x1xf32>
    %c3_i32_81 = arith.constant 3 : i32
    %190 = tpu.dynamic_rotate %187 by %c3_i32_81 dim 1 : vector<8x256xf32>, i32 -> vector<8x256xf32>
    %c-3_i32_82 = arith.constant -3 : i32
    %191 = vector.broadcast %c-3_i32_82 : i32 to vector<1x256xi32>
    %192 = arith.addi %0, %191 : vector<1x256xi32>
    %c0_i32_83 = arith.constant 0 : i32
    %193 = vector.broadcast %c0_i32_83 : i32 to vector<1x256xi32>
    %194 = arith.cmpi sge, %192, %193 : vector<1x256xi32>
    %c128_i32_84 = arith.constant 128 : i32
    %195 = vector.broadcast %c128_i32_84 : i32 to vector<1x256xi32>
    %196 = arith.cmpi slt, %192, %195 : vector<1x256xi32>
    %197 = arith.andi %194, %196 : vector<1x256xi1>
    %cst_85 = arith.constant 0.000000e+00 : f32
    %198 = vector.shape_cast %197 : vector<1x256xi1> to vector<1x256xi1>
    %199 = vector.broadcast %198 : vector<1x256xi1> to vector<8x256xi1>
    %200 = vector.broadcast %cst_85 : f32 to vector<8x256xf32>
    %201 = arith.select %199, %190, %200 : vector<8x256xi1>, vector<8x256xf32>
    %c2_i32_86 = arith.constant 2 : i32
    %202 = tpu.dynamic_rotate %187 by %c2_i32_86 dim 1 : vector<8x256xf32>, i32 -> vector<8x256xf32>
    %c-2_i32_87 = arith.constant -2 : i32
    %203 = vector.broadcast %c-2_i32_87 : i32 to vector<1x256xi32>
    %204 = arith.addi %0, %203 : vector<1x256xi32>
    %c0_i32_88 = arith.constant 0 : i32
    %205 = vector.broadcast %c0_i32_88 : i32 to vector<1x256xi32>
    %206 = arith.cmpi sge, %204, %205 : vector<1x256xi32>
    %c128_i32_89 = arith.constant 128 : i32
    %207 = vector.broadcast %c128_i32_89 : i32 to vector<1x256xi32>
    %208 = arith.cmpi slt, %204, %207 : vector<1x256xi32>
    %209 = arith.andi %206, %208 : vector<1x256xi1>
    %cst_90 = arith.constant 0.000000e+00 : f32
    %210 = vector.shape_cast %209 : vector<1x256xi1> to vector<1x256xi1>
    %211 = vector.broadcast %210 : vector<1x256xi1> to vector<8x256xi1>
    %212 = vector.broadcast %cst_90 : f32 to vector<8x256xf32>
    %213 = arith.select %211, %202, %212 : vector<8x256xi1>, vector<8x256xf32>
    %c1_i32_91 = arith.constant 1 : i32
    %214 = tpu.dynamic_rotate %187 by %c1_i32_91 dim 1 : vector<8x256xf32>, i32 -> vector<8x256xf32>
    %c-1_i32_92 = arith.constant -1 : i32
    %215 = vector.broadcast %c-1_i32_92 : i32 to vector<1x256xi32>
    %216 = arith.addi %0, %215 : vector<1x256xi32>
    %c0_i32_93 = arith.constant 0 : i32
    %217 = vector.broadcast %c0_i32_93 : i32 to vector<1x256xi32>
    %218 = arith.cmpi sge, %216, %217 : vector<1x256xi32>
    %c128_i32_94 = arith.constant 128 : i32
    %219 = vector.broadcast %c128_i32_94 : i32 to vector<1x256xi32>
    %220 = arith.cmpi slt, %216, %219 : vector<1x256xi32>
    %221 = arith.andi %218, %220 : vector<1x256xi1>
    %cst_95 = arith.constant 0.000000e+00 : f32
    %222 = vector.shape_cast %221 : vector<1x256xi1> to vector<1x256xi1>
    %223 = vector.broadcast %222 : vector<1x256xi1> to vector<8x256xi1>
    %224 = vector.broadcast %cst_95 : f32 to vector<8x256xf32>
    %225 = arith.select %223, %214, %224 : vector<8x256xi1>, vector<8x256xf32>
    %c255_i32_96 = arith.constant 255 : i32
    %226 = tpu.dynamic_rotate %187 by %c255_i32_96 dim 1 : vector<8x256xf32>, i32 -> vector<8x256xf32>
    %c1_i32_97 = arith.constant 1 : i32
    %227 = vector.broadcast %c1_i32_97 : i32 to vector<1x256xi32>
    %228 = arith.addi %0, %227 : vector<1x256xi32>
    %c0_i32_98 = arith.constant 0 : i32
    %229 = vector.broadcast %c0_i32_98 : i32 to vector<1x256xi32>
    %230 = arith.cmpi sge, %228, %229 : vector<1x256xi32>
    %c128_i32_99 = arith.constant 128 : i32
    %231 = vector.broadcast %c128_i32_99 : i32 to vector<1x256xi32>
    %232 = arith.cmpi slt, %228, %231 : vector<1x256xi32>
    %233 = arith.andi %230, %232 : vector<1x256xi1>
    %cst_100 = arith.constant 0.000000e+00 : f32
    %234 = vector.shape_cast %233 : vector<1x256xi1> to vector<1x256xi1>
    %235 = vector.broadcast %234 : vector<1x256xi1> to vector<8x256xi1>
    %236 = vector.broadcast %cst_100 : f32 to vector<8x256xf32>
    %237 = arith.select %235, %226, %236 : vector<8x256xi1>, vector<8x256xf32>
    %c254_i32_101 = arith.constant 254 : i32
    %238 = tpu.dynamic_rotate %187 by %c254_i32_101 dim 1 : vector<8x256xf32>, i32 -> vector<8x256xf32>
    %c2_i32_102 = arith.constant 2 : i32
    %239 = vector.broadcast %c2_i32_102 : i32 to vector<1x256xi32>
    %240 = arith.addi %0, %239 : vector<1x256xi32>
    %c0_i32_103 = arith.constant 0 : i32
    %241 = vector.broadcast %c0_i32_103 : i32 to vector<1x256xi32>
    %242 = arith.cmpi sge, %240, %241 : vector<1x256xi32>
    %c128_i32_104 = arith.constant 128 : i32
    %243 = vector.broadcast %c128_i32_104 : i32 to vector<1x256xi32>
    %244 = arith.cmpi slt, %240, %243 : vector<1x256xi32>
    %245 = arith.andi %242, %244 : vector<1x256xi1>
    %cst_105 = arith.constant 0.000000e+00 : f32
    %246 = vector.shape_cast %245 : vector<1x256xi1> to vector<1x256xi1>
    %247 = vector.broadcast %246 : vector<1x256xi1> to vector<8x256xi1>
    %248 = vector.broadcast %cst_105 : f32 to vector<8x256xf32>
    %249 = arith.select %247, %238, %248 : vector<8x256xi1>, vector<8x256xf32>
    %c253_i32_106 = arith.constant 253 : i32
    %250 = tpu.dynamic_rotate %187 by %c253_i32_106 dim 1 : vector<8x256xf32>, i32 -> vector<8x256xf32>
    %c3_i32_107 = arith.constant 3 : i32
    %251 = vector.broadcast %c3_i32_107 : i32 to vector<1x256xi32>
    %252 = arith.addi %0, %251 : vector<1x256xi32>
    %c0_i32_108 = arith.constant 0 : i32
    %253 = vector.broadcast %c0_i32_108 : i32 to vector<1x256xi32>
    %254 = arith.cmpi sge, %252, %253 : vector<1x256xi32>
    %c128_i32_109 = arith.constant 128 : i32
    %255 = vector.broadcast %c128_i32_109 : i32 to vector<1x256xi32>
    %256 = arith.cmpi slt, %252, %255 : vector<1x256xi32>
    %257 = arith.andi %254, %256 : vector<1x256xi1>
    %cst_110 = arith.constant 0.000000e+00 : f32
    %258 = vector.shape_cast %257 : vector<1x256xi1> to vector<1x256xi1>
    %259 = vector.broadcast %258 : vector<1x256xi1> to vector<8x256xi1>
    %260 = vector.broadcast %cst_110 : f32 to vector<8x256xf32>
    %261 = arith.select %259, %250, %260 : vector<8x256xi1>, vector<8x256xf32>
    %c252_i32_111 = arith.constant 252 : i32
    %262 = tpu.dynamic_rotate %187 by %c252_i32_111 dim 1 : vector<8x256xf32>, i32 -> vector<8x256xf32>
    %c4_i32_112 = arith.constant 4 : i32
    %263 = vector.broadcast %c4_i32_112 : i32 to vector<1x256xi32>
    %264 = arith.addi %0, %263 : vector<1x256xi32>
    %c0_i32_113 = arith.constant 0 : i32
    %265 = vector.broadcast %c0_i32_113 : i32 to vector<1x256xi32>
    %266 = arith.cmpi sge, %264, %265 : vector<1x256xi32>
    %c128_i32_114 = arith.constant 128 : i32
    %267 = vector.broadcast %c128_i32_114 : i32 to vector<1x256xi32>
    %268 = arith.cmpi slt, %264, %267 : vector<1x256xi32>
    %269 = arith.andi %266, %268 : vector<1x256xi1>
    %cst_115 = arith.constant 0.000000e+00 : f32
    %270 = vector.shape_cast %269 : vector<1x256xi1> to vector<1x256xi1>
    %271 = vector.broadcast %270 : vector<1x256xi1> to vector<8x256xi1>
    %272 = vector.broadcast %cst_115 : f32 to vector<8x256xf32>
    %273 = arith.select %271, %262, %272 : vector<8x256xi1>, vector<8x256xf32>
    %274 = tpu.concatenate %201, %213, %225, %187, %237, %249, %261, %273 in 0 : vector<8x256xf32>, vector<8x256xf32>, vector<8x256xf32>, vector<8x256xf32>, vector<8x256xf32>, vector<8x256xf32>, vector<8x256xf32>, vector<8x256xf32> -> vector<64x256xf32>
    %cst_116 = arith.constant dense<0.000000e+00> : vector<16x256xf32>
    %275 = tpu.matmul %188, %274, %cst_116 {dimension_numbers = #tpu.dot_dimension_numbers<[1], [0], [0], [1], [0, 0, 1, 1], [], []>} : vector<16x64xf32>, vector<64x256xf32>, vector<16x256xf32> -> vector<16x256xf32>
    %276 = vector.broadcast %189 : vector<16x1xf32> to vector<16x256xf32>
    %277 = arith.addf %275, %276 : vector<16x256xf32>
    %cst_117 = arith.constant 0.000000e+00 : f32
    %278 = vector.broadcast %cst_117 : f32 to vector<16x256xf32>
    %279 = arith.maximumf %277, %278 : vector<16x256xf32>
    %c0_118 = arith.constant 0 : index
    %c0_119 = arith.constant 0 : index
    %280 = vector.load %arg13[%c0_118, %c0_119] : memref<16x80xf32, #tpu.memory_space<vmem>>, vector<16x80xf32>
    %c0_120 = arith.constant 0 : index
    %c0_121 = arith.constant 0 : index
    %281 = vector.load %arg14[%c0_120, %c0_121] : memref<16x1xf32, #tpu.memory_space<vmem>>, vector<16x1xf32>
    %c2_i32_122 = arith.constant 2 : i32
    %282 = tpu.dynamic_rotate %279 by %c2_i32_122 dim 1 : vector<16x256xf32>, i32 -> vector<16x256xf32>
    %c-2_i32_123 = arith.constant -2 : i32
    %283 = vector.broadcast %c-2_i32_123 : i32 to vector<1x256xi32>
    %284 = arith.addi %0, %283 : vector<1x256xi32>
    %c0_i32_124 = arith.constant 0 : i32
    %285 = vector.broadcast %c0_i32_124 : i32 to vector<1x256xi32>
    %286 = arith.cmpi sge, %284, %285 : vector<1x256xi32>
    %c128_i32_125 = arith.constant 128 : i32
    %287 = vector.broadcast %c128_i32_125 : i32 to vector<1x256xi32>
    %288 = arith.cmpi slt, %284, %287 : vector<1x256xi32>
    %289 = arith.andi %286, %288 : vector<1x256xi1>
    %cst_126 = arith.constant 0.000000e+00 : f32
    %290 = vector.shape_cast %289 : vector<1x256xi1> to vector<1x256xi1>
    %291 = vector.broadcast %290 : vector<1x256xi1> to vector<16x256xi1>
    %292 = vector.broadcast %cst_126 : f32 to vector<16x256xf32>
    %293 = arith.select %291, %282, %292 : vector<16x256xi1>, vector<16x256xf32>
    %c1_i32_127 = arith.constant 1 : i32
    %294 = tpu.dynamic_rotate %279 by %c1_i32_127 dim 1 : vector<16x256xf32>, i32 -> vector<16x256xf32>
    %c-1_i32_128 = arith.constant -1 : i32
    %295 = vector.broadcast %c-1_i32_128 : i32 to vector<1x256xi32>
    %296 = arith.addi %0, %295 : vector<1x256xi32>
    %c0_i32_129 = arith.constant 0 : i32
    %297 = vector.broadcast %c0_i32_129 : i32 to vector<1x256xi32>
    %298 = arith.cmpi sge, %296, %297 : vector<1x256xi32>
    %c128_i32_130 = arith.constant 128 : i32
    %299 = vector.broadcast %c128_i32_130 : i32 to vector<1x256xi32>
    %300 = arith.cmpi slt, %296, %299 : vector<1x256xi32>
    %301 = arith.andi %298, %300 : vector<1x256xi1>
    %cst_131 = arith.constant 0.000000e+00 : f32
    %302 = vector.shape_cast %301 : vector<1x256xi1> to vector<1x256xi1>
    %303 = vector.broadcast %302 : vector<1x256xi1> to vector<16x256xi1>
    %304 = vector.broadcast %cst_131 : f32 to vector<16x256xf32>
    %305 = arith.select %303, %294, %304 : vector<16x256xi1>, vector<16x256xf32>
    %c255_i32_132 = arith.constant 255 : i32
    %306 = tpu.dynamic_rotate %279 by %c255_i32_132 dim 1 : vector<16x256xf32>, i32 -> vector<16x256xf32>
    %c1_i32_133 = arith.constant 1 : i32
    %307 = vector.broadcast %c1_i32_133 : i32 to vector<1x256xi32>
    %308 = arith.addi %0, %307 : vector<1x256xi32>
    %c0_i32_134 = arith.constant 0 : i32
    %309 = vector.broadcast %c0_i32_134 : i32 to vector<1x256xi32>
    %310 = arith.cmpi sge, %308, %309 : vector<1x256xi32>
    %c128_i32_135 = arith.constant 128 : i32
    %311 = vector.broadcast %c128_i32_135 : i32 to vector<1x256xi32>
    %312 = arith.cmpi slt, %308, %311 : vector<1x256xi32>
    %313 = arith.andi %310, %312 : vector<1x256xi1>
    %cst_136 = arith.constant 0.000000e+00 : f32
    %314 = vector.shape_cast %313 : vector<1x256xi1> to vector<1x256xi1>
    %315 = vector.broadcast %314 : vector<1x256xi1> to vector<16x256xi1>
    %316 = vector.broadcast %cst_136 : f32 to vector<16x256xf32>
    %317 = arith.select %315, %306, %316 : vector<16x256xi1>, vector<16x256xf32>
    %c254_i32_137 = arith.constant 254 : i32
    %318 = tpu.dynamic_rotate %279 by %c254_i32_137 dim 1 : vector<16x256xf32>, i32 -> vector<16x256xf32>
    %c2_i32_138 = arith.constant 2 : i32
    %319 = vector.broadcast %c2_i32_138 : i32 to vector<1x256xi32>
    %320 = arith.addi %0, %319 : vector<1x256xi32>
    %c0_i32_139 = arith.constant 0 : i32
    %321 = vector.broadcast %c0_i32_139 : i32 to vector<1x256xi32>
    %322 = arith.cmpi sge, %320, %321 : vector<1x256xi32>
    %c128_i32_140 = arith.constant 128 : i32
    %323 = vector.broadcast %c128_i32_140 : i32 to vector<1x256xi32>
    %324 = arith.cmpi slt, %320, %323 : vector<1x256xi32>
    %325 = arith.andi %322, %324 : vector<1x256xi1>
    %cst_141 = arith.constant 0.000000e+00 : f32
    %326 = vector.shape_cast %325 : vector<1x256xi1> to vector<1x256xi1>
    %327 = vector.broadcast %326 : vector<1x256xi1> to vector<16x256xi1>
    %328 = vector.broadcast %cst_141 : f32 to vector<16x256xf32>
    %329 = arith.select %327, %318, %328 : vector<16x256xi1>, vector<16x256xf32>
    %330 = tpu.concatenate %293, %305, %279, %317, %329 in 0 : vector<16x256xf32>, vector<16x256xf32>, vector<16x256xf32>, vector<16x256xf32>, vector<16x256xf32> -> vector<80x256xf32>
    %cst_142 = arith.constant dense<0.000000e+00> : vector<16x256xf32>
    %331 = tpu.matmul %280, %330, %cst_142 {dimension_numbers = #tpu.dot_dimension_numbers<[1], [0], [0], [1], [0, 0, 1, 1], [], []>} : vector<16x80xf32>, vector<80x256xf32>, vector<16x256xf32> -> vector<16x256xf32>
    %332 = vector.broadcast %281 : vector<16x1xf32> to vector<16x256xf32>
    %333 = arith.addf %331, %332 : vector<16x256xf32>
    %cst_143 = arith.constant 0.000000e+00 : f32
    %334 = vector.broadcast %cst_143 : f32 to vector<16x256xf32>
    %335 = arith.maximumf %333, %334 : vector<16x256xf32>
    %c0_144 = arith.constant 0 : index
    %c0_145 = arith.constant 0 : index
    %336 = vector.load %arg15[%c0_144, %c0_145] : memref<16x48xf32, #tpu.memory_space<vmem>>, vector<16x48xf32>
    %c0_146 = arith.constant 0 : index
    %c0_147 = arith.constant 0 : index
    %337 = vector.load %arg16[%c0_146, %c0_147] : memref<16x1xf32, #tpu.memory_space<vmem>>, vector<16x1xf32>
    %c1_i32_148 = arith.constant 1 : i32
    %338 = tpu.dynamic_rotate %335 by %c1_i32_148 dim 1 : vector<16x256xf32>, i32 -> vector<16x256xf32>
    %c-1_i32_149 = arith.constant -1 : i32
    %339 = vector.broadcast %c-1_i32_149 : i32 to vector<1x256xi32>
    %340 = arith.addi %0, %339 : vector<1x256xi32>
    %c0_i32_150 = arith.constant 0 : i32
    %341 = vector.broadcast %c0_i32_150 : i32 to vector<1x256xi32>
    %342 = arith.cmpi sge, %340, %341 : vector<1x256xi32>
    %c128_i32_151 = arith.constant 128 : i32
    %343 = vector.broadcast %c128_i32_151 : i32 to vector<1x256xi32>
    %344 = arith.cmpi slt, %340, %343 : vector<1x256xi32>
    %345 = arith.andi %342, %344 : vector<1x256xi1>
    %cst_152 = arith.constant 0.000000e+00 : f32
    %346 = vector.shape_cast %345 : vector<1x256xi1> to vector<1x256xi1>
    %347 = vector.broadcast %346 : vector<1x256xi1> to vector<16x256xi1>
    %348 = vector.broadcast %cst_152 : f32 to vector<16x256xf32>
    %349 = arith.select %347, %338, %348 : vector<16x256xi1>, vector<16x256xf32>
    %c255_i32_153 = arith.constant 255 : i32
    %350 = tpu.dynamic_rotate %335 by %c255_i32_153 dim 1 : vector<16x256xf32>, i32 -> vector<16x256xf32>
    %c1_i32_154 = arith.constant 1 : i32
    %351 = vector.broadcast %c1_i32_154 : i32 to vector<1x256xi32>
    %352 = arith.addi %0, %351 : vector<1x256xi32>
    %c0_i32_155 = arith.constant 0 : i32
    %353 = vector.broadcast %c0_i32_155 : i32 to vector<1x256xi32>
    %354 = arith.cmpi sge, %352, %353 : vector<1x256xi32>
    %c128_i32_156 = arith.constant 128 : i32
    %355 = vector.broadcast %c128_i32_156 : i32 to vector<1x256xi32>
    %356 = arith.cmpi slt, %352, %355 : vector<1x256xi32>
    %357 = arith.andi %354, %356 : vector<1x256xi1>
    %cst_157 = arith.constant 0.000000e+00 : f32
    %358 = vector.shape_cast %357 : vector<1x256xi1> to vector<1x256xi1>
    %359 = vector.broadcast %358 : vector<1x256xi1> to vector<16x256xi1>
    %360 = vector.broadcast %cst_157 : f32 to vector<16x256xf32>
    %361 = arith.select %359, %350, %360 : vector<16x256xi1>, vector<16x256xf32>
    %362 = tpu.concatenate %349, %335, %361 in 0 : vector<16x256xf32>, vector<16x256xf32>, vector<16x256xf32> -> vector<48x256xf32>
    %cst_158 = arith.constant dense<0.000000e+00> : vector<16x256xf32>
    %363 = tpu.matmul %336, %362, %cst_158 {dimension_numbers = #tpu.dot_dimension_numbers<[1], [0], [0], [1], [0, 0, 1, 1], [], []>} : vector<16x48xf32>, vector<48x256xf32>, vector<16x256xf32> -> vector<16x256xf32>
    %364 = vector.broadcast %337 : vector<16x1xf32> to vector<16x256xf32>
    %365 = arith.addf %363, %364 : vector<16x256xf32>
    %cst_159 = arith.constant 0.000000e+00 : f32
    %366 = vector.broadcast %cst_159 : f32 to vector<16x256xf32>
    %367 = arith.maximumf %365, %366 : vector<16x256xf32>
    %c0_160 = arith.constant 0 : index
    %c0_161 = arith.constant 0 : index
    %368 = vector.load %arg17[%c0_160, %c0_161] : memref<16x8xf32, #tpu.memory_space<vmem>>, vector<16x8xf32>
    %c0_162 = arith.constant 0 : index
    %c0_163 = arith.constant 0 : index
    %369 = vector.load %arg18[%c0_162, %c0_163] : memref<16x1xf32, #tpu.memory_space<vmem>>, vector<16x1xf32>
    %cst_164 = arith.constant dense<0.000000e+00> : vector<16x256xf32>
    %370 = tpu.matmul %368, %187, %cst_164 {dimension_numbers = #tpu.dot_dimension_numbers<[1], [0], [0], [1], [0, 0, 1, 1], [], []>} : vector<16x8xf32>, vector<8x256xf32>, vector<16x256xf32> -> vector<16x256xf32>
    %371 = vector.broadcast %369 : vector<16x1xf32> to vector<16x256xf32>
    %372 = arith.addf %370, %371 : vector<16x256xf32>
    %373 = arith.addf %367, %372 : vector<16x256xf32>
    %c0_165 = arith.constant 0 : index
    %c0_166 = arith.constant 0 : index
    %374 = vector.load %arg19[%c0_165, %c0_166] : memref<16x128xf32, #tpu.memory_space<vmem>>, vector<16x128xf32>
    %c0_167 = arith.constant 0 : index
    %c0_168 = arith.constant 0 : index
    %375 = vector.load %arg20[%c0_167, %c0_168] : memref<16x1xf32, #tpu.memory_space<vmem>>, vector<16x1xf32>
    %c3_i32_169 = arith.constant 3 : i32
    %376 = tpu.dynamic_rotate %373 by %c3_i32_169 dim 1 : vector<16x256xf32>, i32 -> vector<16x256xf32>
    %c-3_i32_170 = arith.constant -3 : i32
    %377 = vector.broadcast %c-3_i32_170 : i32 to vector<1x256xi32>
    %378 = arith.addi %0, %377 : vector<1x256xi32>
    %c0_i32_171 = arith.constant 0 : i32
    %379 = vector.broadcast %c0_i32_171 : i32 to vector<1x256xi32>
    %380 = arith.cmpi sge, %378, %379 : vector<1x256xi32>
    %c128_i32_172 = arith.constant 128 : i32
    %381 = vector.broadcast %c128_i32_172 : i32 to vector<1x256xi32>
    %382 = arith.cmpi slt, %378, %381 : vector<1x256xi32>
    %383 = arith.andi %380, %382 : vector<1x256xi1>
    %cst_173 = arith.constant 0.000000e+00 : f32
    %384 = vector.shape_cast %383 : vector<1x256xi1> to vector<1x256xi1>
    %385 = vector.broadcast %384 : vector<1x256xi1> to vector<16x256xi1>
    %386 = vector.broadcast %cst_173 : f32 to vector<16x256xf32>
    %387 = arith.select %385, %376, %386 : vector<16x256xi1>, vector<16x256xf32>
    %c2_i32_174 = arith.constant 2 : i32
    %388 = tpu.dynamic_rotate %373 by %c2_i32_174 dim 1 : vector<16x256xf32>, i32 -> vector<16x256xf32>
    %c-2_i32_175 = arith.constant -2 : i32
    %389 = vector.broadcast %c-2_i32_175 : i32 to vector<1x256xi32>
    %390 = arith.addi %0, %389 : vector<1x256xi32>
    %c0_i32_176 = arith.constant 0 : i32
    %391 = vector.broadcast %c0_i32_176 : i32 to vector<1x256xi32>
    %392 = arith.cmpi sge, %390, %391 : vector<1x256xi32>
    %c128_i32_177 = arith.constant 128 : i32
    %393 = vector.broadcast %c128_i32_177 : i32 to vector<1x256xi32>
    %394 = arith.cmpi slt, %390, %393 : vector<1x256xi32>
    %395 = arith.andi %392, %394 : vector<1x256xi1>
    %cst_178 = arith.constant 0.000000e+00 : f32
    %396 = vector.shape_cast %395 : vector<1x256xi1> to vector<1x256xi1>
    %397 = vector.broadcast %396 : vector<1x256xi1> to vector<16x256xi1>
    %398 = vector.broadcast %cst_178 : f32 to vector<16x256xf32>
    %399 = arith.select %397, %388, %398 : vector<16x256xi1>, vector<16x256xf32>
    %c1_i32_179 = arith.constant 1 : i32
    %400 = tpu.dynamic_rotate %373 by %c1_i32_179 dim 1 : vector<16x256xf32>, i32 -> vector<16x256xf32>
    %c-1_i32_180 = arith.constant -1 : i32
    %401 = vector.broadcast %c-1_i32_180 : i32 to vector<1x256xi32>
    %402 = arith.addi %0, %401 : vector<1x256xi32>
    %c0_i32_181 = arith.constant 0 : i32
    %403 = vector.broadcast %c0_i32_181 : i32 to vector<1x256xi32>
    %404 = arith.cmpi sge, %402, %403 : vector<1x256xi32>
    %c128_i32_182 = arith.constant 128 : i32
    %405 = vector.broadcast %c128_i32_182 : i32 to vector<1x256xi32>
    %406 = arith.cmpi slt, %402, %405 : vector<1x256xi32>
    %407 = arith.andi %404, %406 : vector<1x256xi1>
    %cst_183 = arith.constant 0.000000e+00 : f32
    %408 = vector.shape_cast %407 : vector<1x256xi1> to vector<1x256xi1>
    %409 = vector.broadcast %408 : vector<1x256xi1> to vector<16x256xi1>
    %410 = vector.broadcast %cst_183 : f32 to vector<16x256xf32>
    %411 = arith.select %409, %400, %410 : vector<16x256xi1>, vector<16x256xf32>
    %c255_i32_184 = arith.constant 255 : i32
    %412 = tpu.dynamic_rotate %373 by %c255_i32_184 dim 1 : vector<16x256xf32>, i32 -> vector<16x256xf32>
    %c1_i32_185 = arith.constant 1 : i32
    %413 = vector.broadcast %c1_i32_185 : i32 to vector<1x256xi32>
    %414 = arith.addi %0, %413 : vector<1x256xi32>
    %c0_i32_186 = arith.constant 0 : i32
    %415 = vector.broadcast %c0_i32_186 : i32 to vector<1x256xi32>
    %416 = arith.cmpi sge, %414, %415 : vector<1x256xi32>
    %c128_i32_187 = arith.constant 128 : i32
    %417 = vector.broadcast %c128_i32_187 : i32 to vector<1x256xi32>
    %418 = arith.cmpi slt, %414, %417 : vector<1x256xi32>
    %419 = arith.andi %416, %418 : vector<1x256xi1>
    %cst_188 = arith.constant 0.000000e+00 : f32
    %420 = vector.shape_cast %419 : vector<1x256xi1> to vector<1x256xi1>
    %421 = vector.broadcast %420 : vector<1x256xi1> to vector<16x256xi1>
    %422 = vector.broadcast %cst_188 : f32 to vector<16x256xf32>
    %423 = arith.select %421, %412, %422 : vector<16x256xi1>, vector<16x256xf32>
    %c254_i32_189 = arith.constant 254 : i32
    %424 = tpu.dynamic_rotate %373 by %c254_i32_189 dim 1 : vector<16x256xf32>, i32 -> vector<16x256xf32>
    %c2_i32_190 = arith.constant 2 : i32
    %425 = vector.broadcast %c2_i32_190 : i32 to vector<1x256xi32>
    %426 = arith.addi %0, %425 : vector<1x256xi32>
    %c0_i32_191 = arith.constant 0 : i32
    %427 = vector.broadcast %c0_i32_191 : i32 to vector<1x256xi32>
    %428 = arith.cmpi sge, %426, %427 : vector<1x256xi32>
    %c128_i32_192 = arith.constant 128 : i32
    %429 = vector.broadcast %c128_i32_192 : i32 to vector<1x256xi32>
    %430 = arith.cmpi slt, %426, %429 : vector<1x256xi32>
    %431 = arith.andi %428, %430 : vector<1x256xi1>
    %cst_193 = arith.constant 0.000000e+00 : f32
    %432 = vector.shape_cast %431 : vector<1x256xi1> to vector<1x256xi1>
    %433 = vector.broadcast %432 : vector<1x256xi1> to vector<16x256xi1>
    %434 = vector.broadcast %cst_193 : f32 to vector<16x256xf32>
    %435 = arith.select %433, %424, %434 : vector<16x256xi1>, vector<16x256xf32>
    %c253_i32_194 = arith.constant 253 : i32
    %436 = tpu.dynamic_rotate %373 by %c253_i32_194 dim 1 : vector<16x256xf32>, i32 -> vector<16x256xf32>
    %c3_i32_195 = arith.constant 3 : i32
    %437 = vector.broadcast %c3_i32_195 : i32 to vector<1x256xi32>
    %438 = arith.addi %0, %437 : vector<1x256xi32>
    %c0_i32_196 = arith.constant 0 : i32
    %439 = vector.broadcast %c0_i32_196 : i32 to vector<1x256xi32>
    %440 = arith.cmpi sge, %438, %439 : vector<1x256xi32>
    %c128_i32_197 = arith.constant 128 : i32
    %441 = vector.broadcast %c128_i32_197 : i32 to vector<1x256xi32>
    %442 = arith.cmpi slt, %438, %441 : vector<1x256xi32>
    %443 = arith.andi %440, %442 : vector<1x256xi1>
    %cst_198 = arith.constant 0.000000e+00 : f32
    %444 = vector.shape_cast %443 : vector<1x256xi1> to vector<1x256xi1>
    %445 = vector.broadcast %444 : vector<1x256xi1> to vector<16x256xi1>
    %446 = vector.broadcast %cst_198 : f32 to vector<16x256xf32>
    %447 = arith.select %445, %436, %446 : vector<16x256xi1>, vector<16x256xf32>
    %c252_i32_199 = arith.constant 252 : i32
    %448 = tpu.dynamic_rotate %373 by %c252_i32_199 dim 1 : vector<16x256xf32>, i32 -> vector<16x256xf32>
    %c4_i32_200 = arith.constant 4 : i32
    %449 = vector.broadcast %c4_i32_200 : i32 to vector<1x256xi32>
    %450 = arith.addi %0, %449 : vector<1x256xi32>
    %c0_i32_201 = arith.constant 0 : i32
    %451 = vector.broadcast %c0_i32_201 : i32 to vector<1x256xi32>
    %452 = arith.cmpi sge, %450, %451 : vector<1x256xi32>
    %c128_i32_202 = arith.constant 128 : i32
    %453 = vector.broadcast %c128_i32_202 : i32 to vector<1x256xi32>
    %454 = arith.cmpi slt, %450, %453 : vector<1x256xi32>
    %455 = arith.andi %452, %454 : vector<1x256xi1>
    %cst_203 = arith.constant 0.000000e+00 : f32
    %456 = vector.shape_cast %455 : vector<1x256xi1> to vector<1x256xi1>
    %457 = vector.broadcast %456 : vector<1x256xi1> to vector<16x256xi1>
    %458 = vector.broadcast %cst_203 : f32 to vector<16x256xf32>
    %459 = arith.select %457, %448, %458 : vector<16x256xi1>, vector<16x256xf32>
    %460 = tpu.concatenate %387, %399, %411, %373, %423, %435, %447, %459 in 0 : vector<16x256xf32>, vector<16x256xf32>, vector<16x256xf32>, vector<16x256xf32>, vector<16x256xf32>, vector<16x256xf32>, vector<16x256xf32>, vector<16x256xf32> -> vector<128x256xf32>
    %cst_204 = arith.constant dense<0.000000e+00> : vector<16x256xf32>
    %461 = tpu.matmul %374, %460, %cst_204 {dimension_numbers = #tpu.dot_dimension_numbers<[1], [0], [0], [1], [0, 0, 1, 1], [], []>} : vector<16x128xf32>, vector<128x256xf32>, vector<16x256xf32> -> vector<16x256xf32>
    %462 = vector.broadcast %375 : vector<16x1xf32> to vector<16x256xf32>
    %463 = arith.addf %461, %462 : vector<16x256xf32>
    %cst_205 = arith.constant 0.000000e+00 : f32
    %464 = vector.broadcast %cst_205 : f32 to vector<16x256xf32>
    %465 = arith.maximumf %463, %464 : vector<16x256xf32>
    %c0_206 = arith.constant 0 : index
    %c0_207 = arith.constant 0 : index
    %466 = vector.load %arg21[%c0_206, %c0_207] : memref<16x80xf32, #tpu.memory_space<vmem>>, vector<16x80xf32>
    %c0_208 = arith.constant 0 : index
    %c0_209 = arith.constant 0 : index
    %467 = vector.load %arg22[%c0_208, %c0_209] : memref<16x1xf32, #tpu.memory_space<vmem>>, vector<16x1xf32>
    %c2_i32_210 = arith.constant 2 : i32
    %468 = tpu.dynamic_rotate %465 by %c2_i32_210 dim 1 : vector<16x256xf32>, i32 -> vector<16x256xf32>
    %c-2_i32_211 = arith.constant -2 : i32
    %469 = vector.broadcast %c-2_i32_211 : i32 to vector<1x256xi32>
    %470 = arith.addi %0, %469 : vector<1x256xi32>
    %c0_i32_212 = arith.constant 0 : i32
    %471 = vector.broadcast %c0_i32_212 : i32 to vector<1x256xi32>
    %472 = arith.cmpi sge, %470, %471 : vector<1x256xi32>
    %c128_i32_213 = arith.constant 128 : i32
    %473 = vector.broadcast %c128_i32_213 : i32 to vector<1x256xi32>
    %474 = arith.cmpi slt, %470, %473 : vector<1x256xi32>
    %475 = arith.andi %472, %474 : vector<1x256xi1>
    %cst_214 = arith.constant 0.000000e+00 : f32
    %476 = vector.shape_cast %475 : vector<1x256xi1> to vector<1x256xi1>
    %477 = vector.broadcast %476 : vector<1x256xi1> to vector<16x256xi1>
    %478 = vector.broadcast %cst_214 : f32 to vector<16x256xf32>
    %479 = arith.select %477, %468, %478 : vector<16x256xi1>, vector<16x256xf32>
    %c1_i32_215 = arith.constant 1 : i32
    %480 = tpu.dynamic_rotate %465 by %c1_i32_215 dim 1 : vector<16x256xf32>, i32 -> vector<16x256xf32>
    %c-1_i32_216 = arith.constant -1 : i32
    %481 = vector.broadcast %c-1_i32_216 : i32 to vector<1x256xi32>
    %482 = arith.addi %0, %481 : vector<1x256xi32>
    %c0_i32_217 = arith.constant 0 : i32
    %483 = vector.broadcast %c0_i32_217 : i32 to vector<1x256xi32>
    %484 = arith.cmpi sge, %482, %483 : vector<1x256xi32>
    %c128_i32_218 = arith.constant 128 : i32
    %485 = vector.broadcast %c128_i32_218 : i32 to vector<1x256xi32>
    %486 = arith.cmpi slt, %482, %485 : vector<1x256xi32>
    %487 = arith.andi %484, %486 : vector<1x256xi1>
    %cst_219 = arith.constant 0.000000e+00 : f32
    %488 = vector.shape_cast %487 : vector<1x256xi1> to vector<1x256xi1>
    %489 = vector.broadcast %488 : vector<1x256xi1> to vector<16x256xi1>
    %490 = vector.broadcast %cst_219 : f32 to vector<16x256xf32>
    %491 = arith.select %489, %480, %490 : vector<16x256xi1>, vector<16x256xf32>
    %c255_i32_220 = arith.constant 255 : i32
    %492 = tpu.dynamic_rotate %465 by %c255_i32_220 dim 1 : vector<16x256xf32>, i32 -> vector<16x256xf32>
    %c1_i32_221 = arith.constant 1 : i32
    %493 = vector.broadcast %c1_i32_221 : i32 to vector<1x256xi32>
    %494 = arith.addi %0, %493 : vector<1x256xi32>
    %c0_i32_222 = arith.constant 0 : i32
    %495 = vector.broadcast %c0_i32_222 : i32 to vector<1x256xi32>
    %496 = arith.cmpi sge, %494, %495 : vector<1x256xi32>
    %c128_i32_223 = arith.constant 128 : i32
    %497 = vector.broadcast %c128_i32_223 : i32 to vector<1x256xi32>
    %498 = arith.cmpi slt, %494, %497 : vector<1x256xi32>
    %499 = arith.andi %496, %498 : vector<1x256xi1>
    %cst_224 = arith.constant 0.000000e+00 : f32
    %500 = vector.shape_cast %499 : vector<1x256xi1> to vector<1x256xi1>
    %501 = vector.broadcast %500 : vector<1x256xi1> to vector<16x256xi1>
    %502 = vector.broadcast %cst_224 : f32 to vector<16x256xf32>
    %503 = arith.select %501, %492, %502 : vector<16x256xi1>, vector<16x256xf32>
    %c254_i32_225 = arith.constant 254 : i32
    %504 = tpu.dynamic_rotate %465 by %c254_i32_225 dim 1 : vector<16x256xf32>, i32 -> vector<16x256xf32>
    %c2_i32_226 = arith.constant 2 : i32
    %505 = vector.broadcast %c2_i32_226 : i32 to vector<1x256xi32>
    %506 = arith.addi %0, %505 : vector<1x256xi32>
    %c0_i32_227 = arith.constant 0 : i32
    %507 = vector.broadcast %c0_i32_227 : i32 to vector<1x256xi32>
    %508 = arith.cmpi sge, %506, %507 : vector<1x256xi32>
    %c128_i32_228 = arith.constant 128 : i32
    %509 = vector.broadcast %c128_i32_228 : i32 to vector<1x256xi32>
    %510 = arith.cmpi slt, %506, %509 : vector<1x256xi32>
    %511 = arith.andi %508, %510 : vector<1x256xi1>
    %cst_229 = arith.constant 0.000000e+00 : f32
    %512 = vector.shape_cast %511 : vector<1x256xi1> to vector<1x256xi1>
    %513 = vector.broadcast %512 : vector<1x256xi1> to vector<16x256xi1>
    %514 = vector.broadcast %cst_229 : f32 to vector<16x256xf32>
    %515 = arith.select %513, %504, %514 : vector<16x256xi1>, vector<16x256xf32>
    %516 = tpu.concatenate %479, %491, %465, %503, %515 in 0 : vector<16x256xf32>, vector<16x256xf32>, vector<16x256xf32>, vector<16x256xf32>, vector<16x256xf32> -> vector<80x256xf32>
    %cst_230 = arith.constant dense<0.000000e+00> : vector<16x256xf32>
    %517 = tpu.matmul %466, %516, %cst_230 {dimension_numbers = #tpu.dot_dimension_numbers<[1], [0], [0], [1], [0, 0, 1, 1], [], []>} : vector<16x80xf32>, vector<80x256xf32>, vector<16x256xf32> -> vector<16x256xf32>
    %518 = vector.broadcast %467 : vector<16x1xf32> to vector<16x256xf32>
    %519 = arith.addf %517, %518 : vector<16x256xf32>
    %cst_231 = arith.constant 0.000000e+00 : f32
    %520 = vector.broadcast %cst_231 : f32 to vector<16x256xf32>
    %521 = arith.maximumf %519, %520 : vector<16x256xf32>
    %c0_232 = arith.constant 0 : index
    %c0_233 = arith.constant 0 : index
    %522 = vector.load %arg23[%c0_232, %c0_233] : memref<16x48xf32, #tpu.memory_space<vmem>>, vector<16x48xf32>
    %c0_234 = arith.constant 0 : index
    %c0_235 = arith.constant 0 : index
    %523 = vector.load %arg24[%c0_234, %c0_235] : memref<16x1xf32, #tpu.memory_space<vmem>>, vector<16x1xf32>
    %c1_i32_236 = arith.constant 1 : i32
    %524 = tpu.dynamic_rotate %521 by %c1_i32_236 dim 1 : vector<16x256xf32>, i32 -> vector<16x256xf32>
    %c-1_i32_237 = arith.constant -1 : i32
    %525 = vector.broadcast %c-1_i32_237 : i32 to vector<1x256xi32>
    %526 = arith.addi %0, %525 : vector<1x256xi32>
    %c0_i32_238 = arith.constant 0 : i32
    %527 = vector.broadcast %c0_i32_238 : i32 to vector<1x256xi32>
    %528 = arith.cmpi sge, %526, %527 : vector<1x256xi32>
    %c128_i32_239 = arith.constant 128 : i32
    %529 = vector.broadcast %c128_i32_239 : i32 to vector<1x256xi32>
    %530 = arith.cmpi slt, %526, %529 : vector<1x256xi32>
    %531 = arith.andi %528, %530 : vector<1x256xi1>
    %cst_240 = arith.constant 0.000000e+00 : f32
    %532 = vector.shape_cast %531 : vector<1x256xi1> to vector<1x256xi1>
    %533 = vector.broadcast %532 : vector<1x256xi1> to vector<16x256xi1>
    %534 = vector.broadcast %cst_240 : f32 to vector<16x256xf32>
    %535 = arith.select %533, %524, %534 : vector<16x256xi1>, vector<16x256xf32>
    %c255_i32_241 = arith.constant 255 : i32
    %536 = tpu.dynamic_rotate %521 by %c255_i32_241 dim 1 : vector<16x256xf32>, i32 -> vector<16x256xf32>
    %c1_i32_242 = arith.constant 1 : i32
    %537 = vector.broadcast %c1_i32_242 : i32 to vector<1x256xi32>
    %538 = arith.addi %0, %537 : vector<1x256xi32>
    %c0_i32_243 = arith.constant 0 : i32
    %539 = vector.broadcast %c0_i32_243 : i32 to vector<1x256xi32>
    %540 = arith.cmpi sge, %538, %539 : vector<1x256xi32>
    %c128_i32_244 = arith.constant 128 : i32
    %541 = vector.broadcast %c128_i32_244 : i32 to vector<1x256xi32>
    %542 = arith.cmpi slt, %538, %541 : vector<1x256xi32>
    %543 = arith.andi %540, %542 : vector<1x256xi1>
    %cst_245 = arith.constant 0.000000e+00 : f32
    %544 = vector.shape_cast %543 : vector<1x256xi1> to vector<1x256xi1>
    %545 = vector.broadcast %544 : vector<1x256xi1> to vector<16x256xi1>
    %546 = vector.broadcast %cst_245 : f32 to vector<16x256xf32>
    %547 = arith.select %545, %536, %546 : vector<16x256xi1>, vector<16x256xf32>
    %548 = tpu.concatenate %535, %521, %547 in 0 : vector<16x256xf32>, vector<16x256xf32>, vector<16x256xf32> -> vector<48x256xf32>
    %cst_246 = arith.constant dense<0.000000e+00> : vector<16x256xf32>
    %549 = tpu.matmul %522, %548, %cst_246 {dimension_numbers = #tpu.dot_dimension_numbers<[1], [0], [0], [1], [0, 0, 1, 1], [], []>} : vector<16x48xf32>, vector<48x256xf32>, vector<16x256xf32> -> vector<16x256xf32>
    %550 = vector.broadcast %523 : vector<16x1xf32> to vector<16x256xf32>
    %551 = arith.addf %549, %550 : vector<16x256xf32>
    %cst_247 = arith.constant 0.000000e+00 : f32
    %552 = vector.broadcast %cst_247 : f32 to vector<16x256xf32>
    %553 = arith.maximumf %551, %552 : vector<16x256xf32>
    %c0_248 = arith.constant 0 : index
    %c0_249 = arith.constant 0 : index
    %554 = vector.load %arg25[%c0_248, %c0_249] : memref<16x3xf32, #tpu.memory_space<vmem>>, vector<16x3xf32>
    %c0_250 = arith.constant 0 : index
    %c0_251 = arith.constant 0 : index
    %555 = vector.load %arg26[%c0_250, %c0_251] : memref<1x3xf32, #tpu.memory_space<vmem>>, vector<1x3xf32>
    %c0_252 = arith.constant 0 : index
    %c0_253 = arith.constant 0 : index
    %556 = vector.load %arg2[%c0_252, %c0_253] : memref<2x256xf32, #tpu.memory_space<vmem>>, vector<2x256xf32>
    %cst_254 = arith.constant dense<0.000000e+00> : vector<2x16xf32>
    %557 = tpu.matmul %556, %553, %cst_254 {dimension_numbers = #tpu.dot_dimension_numbers<[1], [1], [0], [0], [0, 0, 1, 0], [], []>} : vector<2x256xf32>, vector<16x256xf32>, vector<2x16xf32> -> vector<2x16xf32>
    %cst_255 = arith.constant dense<0.000000e+00> : vector<2x3xf32>
    %558 = tpu.matmul %557, %554, %cst_255 {dimension_numbers = #tpu.dot_dimension_numbers<[1], [0], [0], [1], [0, 0, 1, 1], [], []>} : vector<2x16xf32>, vector<16x3xf32>, vector<2x3xf32> -> vector<2x3xf32>
    %559 = vector.broadcast %555 : vector<1x3xf32> to vector<2x3xf32>
    %560 = arith.addf %558, %559 : vector<2x3xf32>
    %c0_256 = arith.constant 0 : index
    %c0_257 = arith.constant 0 : index
    %561 = vector.load %arg27[%c0_256, %c0_257] : memref<2x3xf32, #tpu.memory_space<vmem>>, vector<2x3xf32>
    tpu.vector_store %arg27[%c0_256, %c0_257], %560 {strides = array<i32>} : memref<2x3xf32, #tpu.memory_space<vmem>>, vector<2x3xf32>,
    return
  }
}

</mosaic_0001>

<bundles_post_ra>
// kernel: resnet_baseline_forward.1
= control target key start
LH: loop header
LB: loop body
LE: loop exit
PB: predicated region body
PF: predicated region fallthrough
CT: control target
= control target key end

     0   :  { %s2672_s0 = inlined_call_operand.vmem [shape: f32[8,256], index: 0, kind: input, shape index: {}]   ;;  %s2673_s1 = inlined_call_operand.vmem [shape: s32[1,256], index: 1, kind: input, shape index: {}]   ;;  %s2674_s2 = inlined_call_operand.vmem [shape: f32[2,256], index: 2, kind: input, shape index: {}]   ;;  %s2675_s3 = inlined_call_operand.vmem [shape: f32[8,64], index: 3, kind: input, shape index: {}]   ;;  %s2676_s4 = inlined_call_operand.vmem [shape: f32[8,1], index: 4, kind: input, shape index: {}]   ;;  %s2677_s5 = inlined_call_operand.vmem [shape: f32[8,40], index: 5, kind: input, shape index: {}]   ;;  %s2678_s6 = inlined_call_operand.vmem [shape: f32[8,1], index: 6, kind: input, shape index: {}]   ;;  %s2679_s7 = inlined_call_operand.vmem [shape: f32[8,24], index: 7, kind: input, shape index: {}]   ;;  %s2680_s8 = inlined_call_operand.vmem [shape: f32[8,1], index: 8, kind: input, shape index: {}]   ;;  %s2681_s9 = inlined_call_operand.vmem [shape: f32[8,8], index: 9, kind: input, shape index: {}]   ;;  %s2682_s10 = inlined_call_operand.vmem [shape: f32[8,1], index: 10, kind: input, shape index: {}]   ;;  %s2683_s11 = inlined_call_operand.vmem [shape: f32[16,64], index: 11, kind: input, shape index: {}]   ;;  %s2684_s12 = inlined_call_operand.vmem [shape: f32[16,1], index: 12, kind: input, shape index: {}]   ;;  %s2685_s13 = inlined_call_operand.vmem [shape: f32[16,80], index: 13, kind: input, shape index: {}]   ;;  %s2686_s14 = inlined_call_operand.vmem [shape: f32[16,1], index: 14, kind: input, shape index: {}]   ;;  %s2687_s15 = inlined_call_operand.vmem [shape: f32[16,48], index: 15, kind: input, shape index: {}]   ;;  %s2688_s16 = inlined_call_operand.vmem [shape: f32[16,1], index: 16, kind: input, shape index: {}]   ;;  %s2689_s17 = inlined_call_operand.vmem [shape: f32[16,8], index: 17, kind: input, shape index: {}]   ;;  %s2690_s18 = inlined_call_operand.vmem [shape: f32[16,1], index: 18, kind: input, shape index: {}]   ;;  %s2691_s19 = inlined_call_operand.vmem [shape: f32[16,128], index: 19, kind: input, shape index: {}]   ;;  %s2692_s20 = inlined_call_operand.vmem [shape: f32[16,1], index: 20, kind: input, shape index: {}]   ;;  %s2693_s21 = inlined_call_operand.vmem [shape: f32[16,80], index: 21, kind: input, shape index: {}]   ;;  %s2694_s22 = inlined_call_operand.vmem [shape: f32[16,1], index: 22, kind: input, shape index: {}]   ;;  %s2695_s23 = inlined_call_operand.vmem [shape: f32[16,48], index: 23, kind: input, shape index: {}]   ;;  %s2696_s24 = inlined_call_operand.vmem [shape: f32[16,1], index: 24, kind: input, shape index: {}]   ;;  %s2697_s25 = inlined_call_operand.vmem [shape: f32[16,3], index: 25, kind: input, shape index: {}]   ;;  %s2698_s26 = inlined_call_operand.vmem [shape: f32[1,3], index: 26, kind: input, shape index: {}]   ;;  %s2699_s27 = inlined_call_operand.hbm [shape: f32[2,3], index: 27, kind: output, shape index: {}]  }
   0x1   :  { %2723 = sst [smem:[#allocation5_spill]] %s2672_s0 }
   0x2   :  { %2724 = sst [smem:[#allocation6_spill]] %s2673_s1 }
   0x3   :  { %2725 = sst [smem:[#allocation7_spill]] %s2674_s2 }
   0x4   :  { %2726 = sst [smem:[#allocation8_spill]] %s2675_s3 }
   0x5   :  { %2727 = sst [smem:[#allocation9_spill]] %s2676_s4 }
   0x6   :  { %2728 = sst [smem:[#allocation10_spill]] %s2677_s5 }
   0x7   :  { %2729 = sst [smem:[#allocation11_spill]] %s2678_s6 }
   0x8   :  { %2730 = sst [smem:[#allocation12_spill]] %s2679_s7 }
   0x9   :  { %2731 = sst [smem:[#allocation13_spill]] %s2680_s8 }
   0xa   :  { %2732 = sst [smem:[#allocation14_spill]] %s2681_s9 }
   0xb   :  { %2733 = sst [smem:[#allocation15_spill]] %s2682_s10 }
   0xc   :  { %2734 = sst [smem:[#allocation16_spill]] %s2683_s11 }
   0xd   :  { %s2735_s8 = sld [smem:[#allocation5_spill]]  ;;  %s1607_s30 = smov 125  }
   0xe   :  { %s1608_s9 = smov 124  }
  0x13   :  { %v1759_v0 = vld [vmem:[%s2735_s8] sm:$0xff] }
  0x14   :  { %184 = vrot.lane.b32.xlu1 %v1759_v0, %s1607_s30  ;;  %202 = vrot.lane.b32.xlu0 %v1759_v0, %s1608_s9 }
  0x15   :  { %32 = vsyncpa [#allocation3], 0  ;;  %s1609_s5 = smov 126   ;;  %v1770_v1 = vld [vmem:[%s2735_s8 + $0x8] sm:$0xff]  ;;  %s1610_s10 = smov 127   ;;  %v1614_v2 = vmov 0   ;;  %v96_v12 = vlaneseq }
  0x16   :  { %166 = vrot.lane.b32.xlu2 %v1759_v0, %s1609_s5  ;;  %s1611_s29 = smov 1   ;;  %s1612_s1 = smov 2   ;;  %1578 = vset.pattern.permute.xlu1 %v1614_v2  ;;  %v2740_v25 = vmov 0  ;;  %v2742_v33 = vmov 0  ;;  %v2744_v34 = vmov 0 }
  0x17   :  { %s1613_s6 = smov 3   ;;  %1577 = vset.pattern.permute.xlu2 %v1614_v2  ;;  %1579 = vset.pattern.permute.xlu0 %v1614_v2  ;;  %s2736_s3 = sld [smem:[#allocation6_spill]]  ;;  %v1811_v17 = vand.u32 127, %v96_v12 }
  0x18   :  { %s2737_s8 = sld [smem:[#allocation9_spill]] }
  0x19   :  { %vm2703_vm12 = vcmp.lt.s32.totalorder %v1811_v17, 124  ;;  %vm2706_vm15 = vcmp.lt.s32.totalorder %v1811_v17, 126  ;;  %s2766_s11 = sld [smem:[#allocation8_spill]] }
  0x1a   :  { %s2767_s7 = sld [smem:[#allocation11_spill]] }
  0x1b   :  { %s2768_s28 = sld [smem:[#allocation14_spill]] }
  0x1c   :  { %186 = vrot.lane.b32.xlu1 %v1770_v1, %s1607_s30  ;;  %204 = vrot.lane.b32.xlu0 %v1770_v1, %s1608_s9  ;;  %s2775_s2 = sld [smem:[#allocation10_spill]] }
  0x1d   :  { %v1800_v3 = vld [vmem:[%s2736_s3] sm:$0x3]  ;;  %s2778_s4 = sld [smem:[#allocation15_spill]] }
  0x1e   :  { %168 = vrot.lane.b32.xlu2 %v1770_v1, %s1609_s5  ;;  %v209_v4 = vadd.s32 4, %v1800_v3  ;;  %v191_v5 = vadd.s32 3, %v1800_v3  ;;  %v173_v6 = vadd.s32 2, %v1800_v3  ;;  %v155_v8 = vadd.s32 1, %v1800_v3  ;;  %v91_v16 = vld [vmem:[%s2737_s8] sm:$0xff]  ;;  %s2779_s0 = sld [smem:[#allocation13_spill]] }
  0x1f   :  { %v137_v22 = vadd.s32 4294967295, %v1800_v3  ;;  %v119_v30 = vadd.s32 4294967294, %v1800_v3  ;;  %v101_v44 = vadd.s32 4294967293, %v1800_v3  ;;  %s2782_s3 = sld [smem:[#allocation12_spill]] }
  0x20   :  { %vm210_vm0 = vcmp.ge.s32.totalorder %v209_v4, 0  ;;  %vm211_vm1 = vcmp.lt.s32.totalorder %v209_v4, 128  ;;  %vm192_vm3 = vcmp.ge.s32.totalorder %v191_v5, 0  ;;  %vm193_vm4 = vcmp.lt.s32.totalorder %v191_v5, 128 }
  0x21   :  { %vm212_vm2 = vmand %vm210_vm0, %vm211_vm1  ;;  %vm174_vm5 = vcmp.ge.s32.totalorder %v173_v6, 0  ;;  %vm175_vm6 = vcmp.lt.s32.totalorder %v173_v6, 128  ;;  %vm156_vm8 = vcmp.ge.s32.totalorder %v155_v8, 0  ;;  %vm157_vm9 = vcmp.lt.s32.totalorder %v155_v8, 128 }
  0x22   :  { %v213_v9 = vsel %vm212_vm2, 1, %v1614_v2  ;;  %vm194_vm7 = vmand %vm192_vm3, %vm193_vm4  ;;  %vm2702_vm0 = vcmp.lt.s32.totalorder %v1811_v17, 125  ;;  %vm138_vm3 = vcmp.ge.s32.totalorder %v137_v22, 0  ;;  %vm139_vm4 = vcmp.lt.s32.totalorder %v137_v22, 128 }
  0x23   :  { %vm176_vm10 = vmand %vm174_vm5, %vm175_vm6  ;;  %v214_v13 = vperm.slane %v213_v9, 0  ;;  %v195_v14 = vsel %vm194_vm7, 1, %v1614_v2  ;;  %v215_v15 = vperm.slane %v213_v9, 1  ;;  %vm120_vm7 = vcmp.ge.s32.totalorder %v119_v30, 0 }
  0x24   :  { %150 = vrot.lane.b32.xlu1 %v1770_v1, %s1610_s10  ;;  %148 = vrot.lane.b32.xlu0 %v1759_v0, %s1610_s10  ;;  %vm158_vm11 = vmand %vm156_vm8, %vm157_vm9  ;;  %v177_v18 = vsel %vm176_vm10, 1, %v1614_v2  ;;  %v196_v20 = vperm.slane %v195_v14, 0  ;;  %v197_v21 = vperm.slane %v195_v14, 1  ;;  %vm121_vm8 = vcmp.lt.s32.totalorder %v119_v30, 128 }
  0x25   :  { %vm1816_vm13 = vcmp.eq.s32.totalorder %v214_v13, 1  ;;  %v159_v24 = vsel %vm158_vm11, 1, %v1614_v2  ;;  %vm1821_vm14 = vcmp.eq.s32.totalorder %v215_v15, 1  ;;  %v178_v26 = vperm.slane %v177_v18, 0  ;;  %vm140_vm9 = vmand %vm138_vm3, %vm139_vm4  ;;  %v90_v13 = vld [vmem:[%s2766_s11] sm:$0xff]  ;;  %s2797_s11 = sld [smem:[#allocation16_spill]] }
  0x26   :  { %130 = vrot.lane.b32.xlu2 %v1759_v0, %s1611_s29  ;;  %v2741_v25 = vsel %vm1821_vm14, 4294967295, %v2740_v25  ;;  %v179_v27 = vperm.slane %v177_v18, 1  ;;  %vm1832_vm1 = vcmp.eq.s32.totalorder %v196_v20, 1  ;;  %vm1836_vm2 = vcmp.eq.s32.totalorder %v197_v21, 1  ;;  %vm122_vm4 = vmand %vm120_vm7, %vm121_vm8 }
  0x27   :  { %v2743_v33 = vsel %vm1832_vm1, 4294967295, %v2742_v33  ;;  %v2745_v34 = vsel %vm1836_vm2, 4294967295, %v2744_v34  ;;  %v160_v35 = vperm.slane %v159_v24, 0  ;;  %v161_v36 = vperm.slane %v159_v24, 1 }
  0x28   :  { %vm1848_vm5 = vcmp.eq.s32.totalorder %v178_v26, 1  ;;  %vm1852_vm6 = vcmp.eq.s32.totalorder %v179_v27, 1  ;;  %vm2704_vm10 = vcmp.lt.s32.totalorder %v1811_v17, 127  ;;  %v141_v47 = vsel %vm140_vm9, 1, %v1614_v2 }
  0x29   :  { %vm1870_vm11 = vcmp.eq.s32.totalorder %v160_v35, 1  ;;  %vm1874_vm3 = vcmp.eq.s32.totalorder %v161_v36, 1  ;;  %v123_v52 = vsel %vm122_vm4, 1, %v1614_v2  ;;  %vm103_vm7 = vcmp.lt.s32.totalorder %v101_v44, 128 }
  0x2a   :  { %v142_v53 = vperm.slane %v141_v47, 0  ;;  %v143_v54 = vperm.slane %v141_v47, 1  ;;  %v124_v55 = vperm.slane %v123_v52, 0  ;;  %v125_v56 = vperm.slane %v123_v52, 1 }
  0x2b   :  { %vm2705_vm9 = vcmp.lt.s32.totalorder %v1811_v17, 1  ;;  %vm2707_vm4 = vcmp.lt.s32.totalorder %v1811_v17, 2  ;;  %v2762_v9 = vmov 0 }
  0x2c   :  { %112 = vrot.lane.b32.xlu1 %v1759_v0, %s1612_s1  ;;  %132 = vrot.lane.b32.xlu0 %v1770_v1, %s1611_s29 }
  0x2e   :  { %114 = vrot.lane.b32.xlu2 %v1770_v1, %s1612_s1 }
  0x34   :  { %94 = vrot.lane.b32.xlu1 %v1770_v1, %s1613_s6  ;;  %92 = vrot.lane.b32.xlu0 %v1759_v0, %s1613_s6 }
  0x36   :  { %222 = vperm.xlu2 %1577, %v91_v16  }
  0x70   :  { %v167_v7 = vpop.permute.xlu2 %166 }
  0x78   :  { %v169_v19 = vpop.permute.xlu2 %168 }
  0x79   :  { %v171_v41 = vsel %vm2706_vm15, %v167_v7, %v169_v19  ;;  %v172_v42 = vsel %vm2706_vm15, %v169_v19, %v167_v7 }
  0x80   :  { %v131_v43 = vpop.permute.xlu2 %130 }
  0x86   :  { %v185_v10 = vpop.permute.xlu1 %184  ;;  %v203_v11 = vpop.permute.xlu0 %202 }
  0x88   :  { %v115_v59 = vpop.permute.xlu2 %114 }
  0x8e   :  { %v187_v28 = vpop.permute.xlu1 %186  ;;  %v205_v29 = vpop.permute.xlu0 %204 }
  0x8f   :  { %v207_v31 = vsel %vm2703_vm12, %v203_v11, %v205_v29  ;;  %v208_v32 = vsel %vm2703_vm12, %v205_v29, %v203_v11  ;;  %v189_v37 = vsel %vm2702_vm0, %v185_v10, %v187_v28  ;;  %v190_v38 = vsel %vm2702_vm0, %v187_v28, %v185_v10 }
  0x90   :  { %1419 = vmatpush.msk.msra.mxu0 %vm1816_vm13, %v207_v31  ;;  %1427 = vmatpush.msk.msra.mxu1 %vm1821_vm14, %v208_v32  ;;  %vm102_vm0 = vcmp.ge.s32.totalorder %v101_v44, 0  ;;  %vm1891_vm12 = vcmp.eq.s32.totalorder %v142_v53, 1  ;;  %v2764_v10 = vmov 0  ;;  %v223_v16 = vpop.permute.xlu2 %222  ;;  %v271_v44 = vld [vmem:[%s2775_s2] sm:$0xff] }
  0x91   :  { %vm104_vm8 = vmand %vm102_vm0, %vm103_vm7  ;;  %vm1905_vm0 = vcmp.eq.s32.totalorder %v124_v55, 1  ;;  %vm1909_vm7 = vcmp.eq.s32.totalorder %v125_v56, 1  ;;  %v426_v56 = vld [vmem:[%s2778_s4] sm:$0xff] }
  0x92   :  { %1420 = vmatpush.msk.msra.mxu0 %vm1832_vm1, %v189_v37  ;;  %1428 = vmatpush.msk.msra.mxu1 %vm1836_vm2, %v190_v38  ;;  %v105_v62 = vsel %vm104_vm8, 1, %v1614_v2  ;;  %vm2709_vm8 = vcmp.lt.s32.totalorder %v1811_v17, 3 }
  0x93   :  { %v106_v7 = vperm.slane %v105_v62, 0  ;;  %v107_v8 = vperm.slane %v105_v62, 1 }
  0x94   :  { %1421 = vmatpush.msk.msra.mxu0 %vm1848_vm5, %v171_v41  ;;  %1429 = vmatpush.msk.msra.mxu1 %vm1852_vm6, %v172_v42 }
  0x95   :  { %vm1930_vm15 = vcmp.eq.s32.totalorder %v107_v8, 1 }
  0x96   :  { %v151_v48 = vpop.permute.xlu1 %150  ;;  %v149_v49 = vpop.permute.xlu0 %148  ;;  %v2765_v10 = vsel %vm1930_vm15, 4294967295, %v2764_v10 }
  0x97   :  { %v153_v50 = vsel %vm2704_vm10, %v149_v49, %v151_v48  ;;  %v154_v51 = vsel %vm2704_vm10, %v151_v48, %v149_v49  ;;  %vm1895_vm10 = vcmp.eq.s32.totalorder %v143_v54, 1 }
  0x98   :  { %1422 = vmatpush.msk.msra.mxu0 %vm1870_vm11, %v153_v50  ;;  %1430 = vmatpush.msk.msra.mxu1 %vm1874_vm3, %v154_v51 }
  0x9a   :  { %241 = vmatpush.msra.mxu0 %v1759_v0  ;;  %261 = vmatpush.msra.mxu1 %v1770_v1 }
  0x9e   :  { %v113_v60 = vpop.permute.xlu1 %112  ;;  %v133_v61 = vpop.permute.xlu0 %132 }
  0x9f   :  { %v136_v63 = vsel %vm2705_vm9, %v133_v61, %v131_v43  ;;  %v135_v3 = vsel %vm2705_vm9, %v131_v43, %v133_v61  ;;  %v118_v2 = vsel %vm2707_vm4, %v115_v59, %v113_v60  ;;  %v117_v6 = vsel %vm2707_vm4, %v113_v60, %v115_v59  ;;  %v357_v59 = vld [vmem:[%s2779_s0] sm:$0xff] }
  0xa0   :  { %1423 = vmatpush.msk.msra.mxu0 %vm1891_vm12, %v136_v63  ;;  %1431 = vmatpush.msk.msra.mxu1 %vm1895_vm10, %v135_v3  ;;  %vm1926_vm9 = vcmp.eq.s32.totalorder %v106_v7, 1  ;;  %vm2708_vm4 = vcmask 523264  }
  0xa1   :  { %v2763_v9 = vsel %vm1926_vm9, 4294967295, %v2762_v9 }
  0xa2   :  { %1424 = vmatpush.msk.msra.mxu0 %vm1905_vm0, %v118_v2  ;;  %1432 = vmatpush.msk.msra.mxu1 %vm1909_vm7, %v117_v6  ;;  %v356_v6 = vld [vmem:[%s2782_s3] sm:$0xff]  ;;  %s2898_s3 = sld [smem:[#allocation7_spill]] }
  0xa6   :  { %v95_v11 = vpop.permute.xlu1 %94  ;;  %v93_v12 = vpop.permute.xlu0 %92 }
  0xa7   :  { %v100_v14 = vsel %vm2709_vm8, %v95_v11, %v93_v12  ;;  %v99_v15 = vsel %vm2709_vm8, %v93_v12, %v95_v11  ;;  %vm2769_vm8 = vcmp.lt.s32.totalorder %v1811_v17, 126 }
  0xa8   :  { %1425 = vmatpush.msk.msra.mxu0 %vm1926_vm9, %v100_v14  ;;  %1433 = vmatpush.msk.msra.mxu1 %vm1930_vm15, %v99_v15  ;;  %vm2770_vm15 = vmmov %vm2769_vm8  ;;  %vm2771_vm9 = vcmp.lt.s32.totalorder %v1811_v17, 127 }
  0xa9   :  { %1426 = vmatmul.msk.f32.vlgmr.msra.gmra.mxu0 %vm2708_vm4, %v90_v13  ;;  %1434 = vmatmul.msk.f32.vlgmr.msra.gmra.mxu1 %vm2708_vm4, %v90_v13  ;;  %vm2714_vm4 = vcmask 64512  }
  0xaa   :  { %451 = vmatpush.msrb.mxu0 %v1759_v0  ;;  %471 = vmatpush.msrb.mxu1 %v1770_v1  ;;  %v272_v0 = vld [vmem:[%s2767_s7] sm:$0xff] }
  0xab   :  { %v425_v1 = vld [vmem:[%s2768_s28] sm:$0xff] }
  0xb1   :  { %1451 = vmatmul.msk.f32.vlgmr.msrb.gmra.mxu0 %vm2714_vm4, %v425_v1  ;;  %1452 = vmatmul.msk.f32.vlgmr.msrb.gmra.mxu1 %vm2714_vm4, %v425_v1  ;;  %vm2772_vm4 = vmmov %vm2771_vm9 }
 0x126   :  { %v246_v18 = vpop.f32.mrf.mxu0  ;;  %v266_v19 = vpop.f32.mrf.mxu1 }
 0x127   :  { %v247_v20 = vadd.f32 %v246_v18, %v223_v16  ;;  %v267_v21 = vadd.f32 %v266_v19, %v223_v16 }
 0x129   :  { %v269_v22 = vmax.f32 %v247_v20, 0.0  ;;  %v270_v24 = vmax.f32 %v267_v21, 0.0 }
 0x12b   :  { %299 = vrot.lane.b32.xlu1 %v270_v24, %s1609_s5  ;;  %289 = vrot.lane.b32.xlu2 %v269_v22, %s1610_s10 }
 0x12c   :  { %297 = vrot.lane.b32.xlu0 %v269_v22, %s1609_s5 }
 0x12e   :  { %v453_v11 = vpop.f32.mrf.mxu0  ;;  %v473_v13 = vpop.f32.mrf.mxu1 }
 0x133   :  { %281 = vrot.lane.b32.xlu1 %v269_v22, %s1611_s29  ;;  %283 = vrot.lane.b32.xlu2 %v270_v24, %s1611_s29 }
 0x134   :  { %291 = vrot.lane.b32.xlu0 %v270_v24, %s1610_s10 }
 0x13b   :  { %275 = vrot.lane.b32.xlu1 %v270_v24, %s1612_s1  ;;  %307 = vperm.xlu2 %1577, %v272_v0  }
 0x13c   :  { %273 = vrot.lane.b32.xlu0 %v269_v22, %s1612_s1 }
 0x185   :  { %v290_v30 = vpop.permute.xlu2 %289 }
 0x18d   :  { %v284_v37 = vpop.permute.xlu2 %283 }
 0x195   :  { %v308_v49 = vpop.permute.xlu2 %307 }
 0x19d   :  { %v300_v26 = vpop.permute.xlu1 %299 }
 0x19e   :  { %v298_v27 = vpop.permute.xlu0 %297 }
 0x19f   :  { %v301_v28 = vsel %vm2769_vm8, %v298_v27, %v300_v26  ;;  %v302_v29 = vsel %vm2770_vm15, %v300_v26, %v298_v27  ;;  %vm2773_vm15 = vcmp.lt.s32.totalorder %v1811_v17, 1  ;;  %v481_v26 = vld [vmem:[%s2684_s12 + $0x8] sm:$0xff] }
 0x1a0   :  { %1435 = vmatpush.msk.msra.mxu2 %vm1848_vm5, %v301_v28  ;;  %1440 = vmatpush.msk.msra.mxu3 %vm1852_vm6, %v302_v29  ;;  %vm2774_vm8 = vmmov %vm2773_vm15 }
 0x1a5   :  { %v282_v31 = vpop.permute.xlu1 %281 }
 0x1a6   :  { %v292_v32 = vpop.permute.xlu0 %291  ;;  %v286_v38 = vsel %vm2773_vm15, %v284_v37, %v282_v31  ;;  %v285_v41 = vsel %vm2774_vm8, %v282_v31, %v284_v37  ;;  %vm2780_vm8 = vcmp.lt.s32.totalorder %v1811_v17, 127 }
 0x1a7   :  { %v293_v35 = vsel %vm2771_vm9, %v290_v30, %v292_v32  ;;  %v294_v36 = vsel %vm2772_vm4, %v292_v32, %v290_v30  ;;  %vm310_vm9 = vcmask 326656   ;;  %vm2776_vm4 = vcmp.lt.s32.totalorder %v1811_v17, 2 }
 0x1a8   :  { %1436 = vmatpush.msk.msra.mxu2 %vm1870_vm11, %v293_v35  ;;  %1441 = vmatpush.msk.msra.mxu3 %vm1874_vm3, %v294_v36  ;;  %vm2777_vm15 = vmmov %vm2776_vm4 }
 0x1aa   :  { %327 = vmatpush.msra.mxu2 %v269_v22  ;;  %347 = vmatpush.msra.mxu3 %v270_v24 }
 0x1ac   :  { %1437 = vmatpush.msk.msra.mxu2 %vm1891_vm12, %v286_v38  ;;  %1442 = vmatpush.msk.msra.mxu3 %vm1895_vm10, %v285_v41 }
 0x1ad   :  { %v276_v42 = vpop.permute.xlu1 %275 }
 0x1ae   :  { %v274_v43 = vpop.permute.xlu0 %273 }
 0x1af   :  { %v278_v47 = vsel %vm2776_vm4, %v276_v42, %v274_v43  ;;  %v277_v48 = vsel %vm2777_vm15, %v274_v43, %v276_v42  ;;  %vm379_vm4 = vcmask 195584   ;;  %vm2783_vm15 = vcmp.lt.s32.totalorder %v1811_v17, 1  ;;  %v480_v43 = vld [vmem:[%s2684_s12] sm:$0xff] }
 0x1b0   :  { %1438 = vmatpush.msk.msra.mxu2 %vm1905_vm0, %v278_v47  ;;  %1443 = vmatpush.msk.msra.mxu3 %vm1909_vm7, %v277_v48 }
 0x1b1   :  { %1439 = vmatmul.msk.f32.vlgmr.msra.gmra.mxu2 %vm310_vm9, %v271_v44  ;;  %1444 = vmatmul.msk.f32.vlgmr.msra.gmra.mxu3 %vm310_vm9, %v271_v44  ;;  %vm2781_vm9 = vmmov %vm2780_vm8 }
 0x234   :  { %v331_v50 = vpop.f32.mrf.mxu2  ;;  %v351_v51 = vpop.f32.mrf.mxu3 }
 0x235   :  { %v332_v52 = vadd.f32 %v331_v50, %v308_v49  ;;  %v352_v53 = vadd.f32 %v351_v51, %v308_v49 }
 0x237   :  { %v354_v54 = vmax.f32 %v332_v52, 0.0  ;;  %v355_v55 = vmax.f32 %v352_v53, 0.0 }
 0x239   :  { %358 = vrot.lane.b32.xlu2 %v354_v54, %s1611_s29  ;;  %366 = vrot.lane.b32.xlu0 %v354_v54, %s1610_s10 }
 0x23a   :  { %368 = vrot.lane.b32.xlu1 %v355_v55, %s1610_s10 }
 0x241   :  { %429 = vperm.xlu2 %1577, %v426_v56   ;;  %360 = vrot.lane.b32.xlu0 %v355_v55, %s1611_s29 }
 0x242   :  { %376 = vperm.xlu1 %1578, %v357_v59  }
 0x293   :  { %v359_v3 = vpop.permute.xlu2 %358 }
 0x29b   :  { %v430_v14 = vpop.permute.xlu2 %429 }
 0x29c   :  { %v454_v20 = vadd.f32 %v453_v11, %v430_v14  ;;  %v474_v21 = vadd.f32 %v473_v13, %v430_v14 }
 0x2ab   :  { %v367_v60 = vpop.permute.xlu0 %366 }
 0x2ac   :  { %v369_v61 = vpop.permute.xlu1 %368 }
 0x2ad   :  { %v370_v62 = vsel %vm2780_vm8, %v367_v60, %v369_v61  ;;  %v371_v63 = vsel %vm2781_vm9, %v369_v61, %v367_v60  ;;  %vm2784_vm8 = vmmov %vm2783_vm15  ;;  %vm2785_vm9 = vcmp.lt.s32.totalorder %v1811_v17, 124 }
 0x2ae   :  { %1445 = vmatpush.msk.msrb.mxu2 %vm1870_vm11, %v370_v62  ;;  %1448 = vmatpush.msk.msrb.mxu3 %vm1874_vm3, %v371_v63  ;;  %v478_v62 = vld [vmem:[%s2797_s11] sm:$0xff] }
 0x2b0   :  { %397 = vmatpush.msrb.mxu2 %v354_v54  ;;  %417 = vmatpush.msrb.mxu3 %v355_v55 }
 0x2b3   :  { %v361_v2 = vpop.permute.xlu0 %360 }
 0x2b4   :  { %v363_v7 = vsel %vm2783_vm15, %v361_v2, %v359_v3  ;;  %v362_v8 = vsel %vm2784_vm8, %v359_v3, %v361_v2  ;;  %v377_v12 = vpop.permute.xlu1 %376  ;;  %vm2787_vm15 = vcmp.lt.s32.totalorder %v1811_v17, 125  ;;  %v479_v2 = vld [vmem:[%s2797_s11 + $0x8] sm:$0xff] }
 0x2b5   :  { %1446 = vmatpush.msk.msrb.mxu2 %vm1891_vm12, %v363_v7  ;;  %1449 = vmatpush.msk.msrb.mxu3 %vm1895_vm10, %v362_v8  ;;  %vm2788_vm8 = vmmov %vm2787_vm15 }
 0x2b6   :  { %1447 = vmatmul.msk.f32.vlgmr.msrb.gmra.mxu2 %vm379_vm4, %v356_v6  ;;  %1450 = vmatmul.msk.f32.vlgmr.msrb.gmra.mxu3 %vm379_vm4, %v356_v6  ;;  %vm2786_vm4 = vmmov %vm2785_vm9 }
 0x339   :  { %v400_v15 = vpop.f32.mrf.mxu2  ;;  %v420_v16 = vpop.f32.mrf.mxu3 }
 0x33a   :  { %v401_v18 = vadd.f32 %v400_v15, %v377_v12  ;;  %v421_v19 = vadd.f32 %v420_v16, %v377_v12 }
 0x33c   :  { %v423_v22 = vmax.f32 %v401_v18, 0.0  ;;  %v424_v24 = vmax.f32 %v421_v19, 0.0 }
 0x33e   :  { %v2029_v0 = vadd.f32 %v454_v20, %v423_v22  ;;  %v2031_v1 = vadd.f32 %v474_v21, %v424_v24  ;;  %v607_v24 = vld [vmem:[%s2686_s14 + $0x8] sm:$0xff] }
 0x340   :  { %532 = vrot.lane.b32.xlu1 %v2031_v1, %s1608_s9  ;;  %522 = vrot.lane.b32.xlu2 %v2029_v0, %s1607_s30 }
 0x341   :  { %530 = vrot.lane.b32.xlu0 %v2029_v0, %s1608_s9 }
 0x348   :  { %514 = vrot.lane.b32.xlu1 %v2029_v0, %s1609_s5  ;;  %516 = vrot.lane.b32.xlu2 %v2031_v1, %s1609_s5 }
 0x349   :  { %524 = vrot.lane.b32.xlu0 %v2031_v1, %s1607_s30 }
 0x350   :  { %508 = vrot.lane.b32.xlu1 %v2031_v1, %s1610_s10  ;;  %498 = vrot.lane.b32.xlu2 %v2029_v0, %s1611_s29 }
 0x351   :  { %506 = vrot.lane.b32.xlu0 %v2029_v0, %s1610_s10 }
 0x358   :  { %490 = vrot.lane.b32.xlu1 %v2029_v0, %s1612_s1  ;;  %492 = vrot.lane.b32.xlu2 %v2031_v1, %s1612_s1 }
 0x359   :  { %500 = vrot.lane.b32.xlu0 %v2031_v1, %s1611_s29 }
 0x360   :  { %484 = vrot.lane.b32.xlu1 %v2031_v1, %s1613_s6  ;;  %545 = vperm.xlu2 %1577, %v481_v26   ;;  %v606_v26 = vld [vmem:[%s2686_s14] sm:$0xff] }
 0x361   :  { %482 = vrot.lane.b32.xlu0 %v2029_v0, %s1613_s6 }
 0x369   :  { %540 = vperm.xlu0 %1579, %v480_v43  }
 0x39a   :  { %v523_v27 = vpop.permute.xlu2 %522 }
 0x3a2   :  { %v517_v32 = vpop.permute.xlu2 %516 }
 0x3aa   :  { %v499_v47 = vpop.permute.xlu2 %498 }
 0x3b2   :  { %v533_v28 = vpop.permute.xlu1 %532  ;;  %v493_v55 = vpop.permute.xlu2 %492 }
 0x3b3   :  { %v531_v29 = vpop.permute.xlu0 %530 }
 0x3b4   :  { %v534_v30 = vsel %vm2785_vm9, %v531_v29, %v533_v28  ;;  %v535_v31 = vsel %vm2786_vm4, %v533_v28, %v531_v29  ;;  %vm2789_vm9 = vcmp.lt.s32.totalorder %v1811_v17, 126 }
 0x3b5   :  { %1453 = vmatpush.msk.msra.mxu2 %vm1816_vm13, %v534_v30  ;;  %1462 = vmatpush.msk.msra.mxu3 %vm1821_vm14, %v535_v31  ;;  %vm2790_vm4 = vmmov %vm2789_vm9 }
 0x3ba   :  { %v515_v35 = vpop.permute.xlu1 %514  ;;  %v546_v15 = vpop.permute.xlu2 %545 }
 0x3bb   :  { %v525_v36 = vpop.permute.xlu0 %524  ;;  %v518_v41 = vsel %vm2789_vm9, %v515_v35, %v517_v32  ;;  %v519_v42 = vsel %vm2790_vm4, %v517_v32, %v515_v35  ;;  %vm2793_vm9 = vcmp.lt.s32.totalorder %v1811_v17, 1 }
 0x3bc   :  { %v526_v37 = vsel %vm2787_vm15, %v523_v27, %v525_v36  ;;  %v527_v38 = vsel %vm2788_vm8, %v525_v36, %v523_v27  ;;  %vm2791_vm15 = vcmp.lt.s32.totalorder %v1811_v17, 127  ;;  %vm2794_vm4 = vmmov %vm2793_vm9 }
 0x3bd   :  { %1454 = vmatpush.msk.msra.mxu2 %vm1832_vm1, %v526_v37  ;;  %1463 = vmatpush.msk.msra.mxu3 %vm1836_vm2, %v527_v38  ;;  %vm2792_vm8 = vmmov %vm2791_vm15  ;;  %vm2802_vm2 = vcmask 523264  }
 0x3be   :  { %vm2803_vm1 = vmmov %vm2802_vm2 }
 0x3bf   :  { %1455 = vmatpush.msk.msra.mxu2 %vm1848_vm5, %v518_v41  ;;  %1464 = vmatpush.msk.msra.mxu3 %vm1852_vm6, %v519_v42  ;;  %vm2804_vm14 = vmmov %vm2803_vm1 }
 0x3c2   :  { %v509_v44 = vpop.permute.xlu1 %508 }
 0x3c3   :  { %v507_v48 = vpop.permute.xlu0 %506 }
 0x3c4   :  { %v510_v49 = vsel %vm2791_vm15, %v507_v48, %v509_v44  ;;  %v511_v50 = vsel %vm2792_vm8, %v509_v44, %v507_v48  ;;  %vm2795_vm15 = vcmp.lt.s32.totalorder %v1811_v17, 2 }
 0x3c5   :  { %1456 = vmatpush.msk.msra.mxu2 %vm1870_vm11, %v510_v49  ;;  %1465 = vmatpush.msk.msra.mxu3 %vm1874_vm3, %v511_v50  ;;  %vm2796_vm8 = vmmov %vm2795_vm15 }
 0x3c7   :  { %566 = vmatpush.msra.mxu2 %v2029_v0  ;;  %589 = vmatpush.msra.mxu3 %v2031_v1 }
 0x3ca   :  { %v491_v51 = vpop.permute.xlu1 %490 }
 0x3cb   :  { %v501_v52 = vpop.permute.xlu0 %500  ;;  %v494_v56 = vsel %vm2795_vm15, %v491_v51, %v493_v55  ;;  %v495_v59 = vsel %vm2796_vm8, %v493_v55, %v491_v51  ;;  %vm2800_vm15 = vnez %v2763_v9  ;;  %vm2801_vm8 = vnez %v2765_v10 }
 0x3cc   :  { %v502_v53 = vsel %vm2793_vm9, %v499_v47, %v501_v52  ;;  %v503_v54 = vsel %vm2794_vm4, %v501_v52, %v499_v47  ;;  %vm2798_vm9 = vcmp.lt.s32.totalorder %v1811_v17, 3 }
 0x3cd   :  { %1457 = vmatpush.msk.msra.mxu2 %vm1891_vm12, %v503_v54  ;;  %1466 = vmatpush.msk.msra.mxu3 %vm1895_vm10, %v502_v53  ;;  %vm2799_vm4 = vmmov %vm2798_vm9 }
 0x3cf   :  { %1458 = vmatpush.msk.msra.mxu2 %vm1905_vm0, %v495_v59  ;;  %1467 = vmatpush.msk.msra.mxu3 %vm1909_vm7, %v494_v56 }
 0x3d2   :  { %v485_v60 = vpop.permute.xlu1 %484 }
 0x3d3   :  { %v483_v61 = vpop.permute.xlu0 %482 }
 0x3d4   :  { %v486_v63 = vsel %vm2798_vm9, %v483_v61, %v485_v60  ;;  %v487_v3 = vsel %vm2799_vm4, %v485_v60, %v483_v61  ;;  %vm2805_vm9 = vmmov %vm2803_vm1 }
 0x3d5   :  { %1459 = vmatpush.msk.msra.mxu2 %vm2800_vm15, %v487_v3  ;;  %1468 = vmatpush.msk.msra.mxu3 %vm2801_vm8, %v486_v63 }
 0x3d6   :  { %1460 = vmatmul.msk.f32.vlgmr.msra.gmra.mxu2 %vm2802_vm2, %v478_v62  ;;  %1469 = vmatmul.msk.f32.vlgmr.msra.gmra.mxu3 %vm2803_vm1, %v478_v62 }
 0x3db   :  { %v541_v6 = vpop.permute.xlu0 %540 }
 0x3de   :  { %1461 = vmatmul.msk.f32.gmra.mxu2 %vm2804_vm14, %v479_v2  ;;  %1470 = vmatmul.msk.f32.gmra.mxu3 %vm2805_vm9, %v479_v2  ;;  %vm2806_vm14 = vcmp.lt.s32.totalorder %v1811_v17, 126  ;;  %vm2810_vm9 = vcmp.lt.s32.totalorder %v1811_v17, 127  ;;  %v604_v2 = vld [vmem:[%s2685_s13] sm:$0xff] }
 0x3df   :  { %vm2807_vm1 = vmmov %vm2806_vm14 }
 0x3e0   :  { %vm2808_vm2 = vmmov %vm2807_vm1 }
 0x3e1   :  { %vm2809_vm4 = vmmov %vm2807_vm1 }
 0x459   :  { %v571_v7 = vpop.f32.mrf.mxu2  ;;  %v594_v8 = vpop.f32.mrf.mxu3 }
 0x45a   :  { %v572_v11 = vadd.f32 %v571_v7, %v541_v6  ;;  %v595_v12 = vadd.f32 %v594_v8, %v541_v6  ;;  %v605_v8 = vld [vmem:[%s2685_s13 + $0x8] sm:$0xff] }
 0x45c   :  { %v600_v13 = vmax.f32 %v572_v11, 0.0  ;;  %v601_v14 = vmax.f32 %v595_v12, 0.0  ;;  %v842_v11 = vld [vmem:[%s2689_s17] sm:$0xff] }
 0x45e   :  { %644 = vrot.lane.b32.xlu0 %v601_v14, %s1610_s10  ;;  %660 = vrot.lane.b32.xlu2 %v601_v14, %s1609_s5 }
 0x45f   :  { %656 = vrot.lane.b32.xlu1 %v600_v13, %s1609_s5 }
 0x461   :  { %v574_v16 = vpop.f32.mrf.mxu2  ;;  %v597_v20 = vpop.f32.mrf.mxu3 }
 0x462   :  { %v575_v18 = vadd.f32 %v574_v16, %v546_v15  ;;  %v598_v21 = vadd.f32 %v597_v20, %v546_v15 }
 0x464   :  { %v602_v19 = vmax.f32 %v575_v18, 0.0  ;;  %v603_v22 = vmax.f32 %v598_v21, 0.0 }
 0x466   :  { %642 = vrot.lane.b32.xlu0 %v602_v19, %s1610_s10  ;;  %640 = vrot.lane.b32.xlu2 %v600_v13, %s1610_s10 }
 0x467   :  { %658 = vrot.lane.b32.xlu1 %v602_v19, %s1609_s5 }
 0x46e   :  { %624 = vrot.lane.b32.xlu0 %v600_v13, %s1611_s29  ;;  %662 = vrot.lane.b32.xlu2 %v603_v22, %s1609_s5 }
 0x46f   :  { %628 = vrot.lane.b32.xlu1 %v601_v14, %s1611_s29 }
 0x476   :  { %614 = vrot.lane.b32.xlu0 %v603_v22, %s1612_s1  ;;  %630 = vrot.lane.b32.xlu2 %v603_v22, %s1611_s29 }
 0x477   :  { %646 = vrot.lane.b32.xlu1 %v603_v22, %s1610_s10 }
 0x47e   :  { %679 = vperm.xlu0 %1579, %v607_v24   ;;  %610 = vrot.lane.b32.xlu2 %v602_v19, %s1612_s1 }
 0x47f   :  { %626 = vrot.lane.b32.xlu1 %v602_v19, %s1611_s29 }
 0x486   :  { %612 = vrot.lane.b32.xlu2 %v601_v14, %s1612_s1 }
 0x487   :  { %608 = vrot.lane.b32.xlu1 %v600_v13, %s1612_s1 }
 0x48f   :  { %674 = vperm.xlu1 %1578, %v606_v26  }
 0x4b8   :  { %v661_v27 = vpop.permute.xlu2 %660 }
 0x4c0   :  { %v641_v28 = vpop.permute.xlu2 %640 }
 0x4c8   :  { %v663_v31 = vpop.permute.xlu2 %662 }
 0x4d0   :  { %v645_v30 = vpop.permute.xlu0 %644  ;;  %v631_v43 = vpop.permute.xlu2 %630 }
 0x4d1   :  { %v657_v29 = vpop.permute.xlu1 %656 }
 0x4d2   :  { %v664_v37 = vsel %vm2808_vm2, %v657_v29, %v661_v27  ;;  %v666_v38 = vsel %vm2809_vm4, %v661_v27, %v657_v29  ;;  %vm2814_vm4 = vcmp.lt.s32.totalorder %v1811_v17, 1  ;;  %v844_v29 = vld [vmem:[%s2690_s18] sm:$0xff] }
 0x4d8   :  { %v643_v41 = vpop.permute.xlu0 %642  ;;  %v611_v52 = vpop.permute.xlu2 %610 }
 0x4d9   :  { %v659_v32 = vpop.permute.xlu1 %658 }
 0x4da   :  { %v665_v35 = vsel %vm2806_vm14, %v659_v32, %v663_v31  ;;  %v667_v36 = vsel %vm2807_vm1, %v663_v31, %v659_v32  ;;  %vm2811_vm14 = vmmov %vm2810_vm9  ;;  %v741_v31 = vld [vmem:[%s2688_s16] sm:$0xff] }
 0x4db   :  { %1471 = vmatpush.msk.msra.mxu0 %vm1848_vm5, %v665_v35  ;;  %1481 = vmatpush.msk.msra.mxu1 %vm1852_vm6, %v667_v36  ;;  %vm2812_vm1 = vmmov %vm2810_vm9 }
 0x4dc   :  { %v648_v50 = vsel %vm2812_vm1, %v641_v28, %v645_v30  ;;  %vm2813_vm2 = vmmov %vm2812_vm1 }
 0x4dd   :  { %1472 = vmatpush.msk.msra.mxu0 %vm1848_vm5, %v664_v37  ;;  %1482 = vmatpush.msk.msra.mxu1 %vm1852_vm6, %v666_v38  ;;  %v650_v51 = vsel %vm2813_vm2, %v645_v30, %v641_v28  ;;  %vm2817_vm1 = vmmov %vm2814_vm4  ;;  %vm2818_vm2 = vcmp.lt.s32.totalorder %v1811_v17, 2  ;;  %v742_v28 = vld [vmem:[%s2688_s16 + $0x8] sm:$0xff] }
 0x4de   :  { %v845_v30 = vld [vmem:[%s2690_s18 + $0x8] sm:$0xff] }
 0x4e0   :  { %v625_v44 = vpop.permute.xlu0 %624  ;;  %v613_v63 = vpop.permute.xlu2 %612 }
 0x4e1   :  { %v629_v42 = vpop.permute.xlu1 %628 }
 0x4e2   :  { %v634_v60 = vsel %vm2817_vm1, %v629_v42, %v625_v44  ;;  %vm2821_vm1 = vmmov %vm2818_vm2 }
 0x4e8   :  { %v615_v56 = vpop.permute.xlu0 %614 }
 0x4e9   :  { %v647_v47 = vpop.permute.xlu1 %646  ;;  %v617_v61 = vsel %vm2818_vm2, %v611_v52, %v615_v56 }
 0x4ea   :  { %v649_v48 = vsel %vm2810_vm9, %v643_v41, %v647_v47  ;;  %v651_v49 = vsel %vm2811_vm14, %v647_v47, %v643_v41  ;;  %vm2815_vm9 = vmmov %vm2814_vm4 }
 0x4eb   :  { %1473 = vmatpush.msk.msra.mxu0 %vm1870_vm11, %v649_v48  ;;  %1483 = vmatpush.msk.msra.mxu1 %vm1874_vm3, %v651_v49  ;;  %vm2816_vm14 = vmmov %vm2814_vm4 }
 0x4ec   :  { %v632_v59 = vsel %vm2816_vm14, %v625_v44, %v629_v42  ;;  %vm2820_vm14 = vmmov %vm2818_vm2 }
 0x4ed   :  { %1474 = vmatpush.msk.msra.mxu0 %vm1870_vm11, %v648_v50  ;;  %1484 = vmatpush.msk.msra.mxu1 %vm1874_vm3, %v650_v51 }
 0x4ef   :  { %699 = vmatpush.msra.mxu0 %v602_v19  ;;  %722 = vmatpush.msra.mxu1 %v603_v22 }
 0x4f0   :  { %v680_v16 = vpop.permute.xlu0 %679 }
 0x4f1   :  { %700 = vmatpush.msra.mxu0 %v600_v13  ;;  %723 = vmatpush.msra.mxu1 %v601_v14  ;;  %v627_v53 = vpop.permute.xlu1 %626 }
 0x4f2   :  { %v633_v54 = vsel %vm2814_vm4, %v627_v53, %v631_v43  ;;  %v635_v55 = vsel %vm2815_vm9, %v631_v43, %v627_v53  ;;  %vm2819_vm4 = vmmov %vm2818_vm2  ;;  %vm2722_vm9 = vcmask 654336   ;;  %vm2822_vm2 = vcmask 64512  }
 0x4f3   :  { %1475 = vmatpush.msk.msra.mxu0 %vm1891_vm12, %v635_v55  ;;  %1485 = vmatpush.msk.msra.mxu1 %vm1895_vm10, %v633_v54  ;;  %v619_v62 = vsel %vm2819_vm4, %v615_v56, %v611_v52  ;;  %vm2823_vm4 = vmmov %vm2822_vm2  ;;  %v739_v52 = vld [vmem:[%s2687_s15] sm:$0xff]  ;;  %v740_v55 = vld [vmem:[%s2687_s15 + $0x8] sm:$0xff] }
 0x4f5   :  { %1476 = vmatpush.msk.msra.mxu0 %vm1891_vm12, %v634_v60  ;;  %1486 = vmatpush.msk.msra.mxu1 %vm1895_vm10, %v632_v59 }
 0x4f7   :  { %1477 = vmatpush.msk.msra.mxu0 %vm1905_vm0, %v619_v62  ;;  %1487 = vmatpush.msk.msra.mxu1 %vm1909_vm7, %v617_v61 }
 0x4f9   :  { %v609_v3 = vpop.permute.xlu1 %608 }
 0x4fa   :  { %v616_v6 = vsel %vm2820_vm14, %v609_v3, %v613_v63  ;;  %v618_v7 = vsel %vm2821_vm1, %v613_v63, %v609_v3  ;;  %vm2824_vm14 = vmmov %vm2822_vm2 }
 0x4fb   :  { %1478 = vmatpush.msk.msra.mxu0 %vm1905_vm0, %v618_v7  ;;  %1488 = vmatpush.msk.msra.mxu1 %vm1909_vm7, %v616_v6  ;;  %vm2825_vm1 = vmmov %vm2822_vm2 }
 0x4fc   :  { %1479 = vmatmul.msk.f32.vlgmr.msra.gmra.mxu0 %vm2722_vm9, %v604_v2  ;;  %1489 = vmatmul.msk.f32.vlgmr.msra.gmra.mxu1 %vm2722_vm9, %v604_v2 }
 0x4fd   :  { %877 = vmatpush.msrb.mxu0 %v2029_v0  ;;  %900 = vmatpush.msrb.mxu1 %v2031_v1  ;;  %v843_v0 = vld [vmem:[%s2689_s17 + $0x8] sm:$0xff]  ;;  %s1410_s17 = sshll.u32 %s2699_s27, 4  ;;  %s1411_s17 = int_to_ptr.hbm [resolvable:$true] %s1410_s17 }
 0x501   :  { %v675_v1 = vpop.permute.xlu1 %674 }
 0x504   :  { %1480 = vmatmul.msk.f32.gmra.mxu0 %vm2722_vm9, %v605_v8  ;;  %1490 = vmatmul.msk.f32.gmra.mxu1 %vm2722_vm9, %v605_v8 }
 0x50c   :  { %1503 = vmatmul.msk.f32.vlgmr.msrb.gmra.mxu0 %vm2822_vm2, %v842_v11  ;;  %1505 = vmatmul.msk.f32.vlgmr.msrb.gmra.mxu1 %vm2823_vm4, %v842_v11  ;;  %vm2826_vm2 = vcmp.lt.s32.totalorder %v1811_v17, 127 }
 0x50d   :  { %vm2827_vm4 = vmmov %vm2826_vm2 }
 0x514   :  { %1504 = vmatmul.msk.f32.gmra.mxu0 %vm2824_vm14, %v843_v0  ;;  %1506 = vmatmul.msk.f32.gmra.mxu1 %vm2825_vm1, %v843_v0  ;;  %vm2828_vm14 = vmmov %vm2826_vm2 }
 0x515   :  { %vm2829_vm1 = vmmov %vm2826_vm2 }
 0x579   :  { %v706_v12 = vpop.f32.mrf.mxu0  ;;  %v729_v13 = vpop.f32.mrf.mxu1 }
 0x57a   :  { %v707_v14 = vadd.f32 %v706_v12, %v675_v1  ;;  %v730_v26 = vadd.f32 %v729_v13, %v675_v1 }
 0x57c   :  { %v735_v15 = vmax.f32 %v707_v14, 0.0  ;;  %v736_v27 = vmax.f32 %v730_v26, 0.0 }
 0x57e   :  { %759 = vrot.lane.b32.xlu1 %v735_v15, %s1610_s10 }
 0x581   :  { %v709_v18 = vpop.f32.mrf.mxu0  ;;  %v732_v19 = vpop.f32.mrf.mxu1 }
 0x582   :  { %v710_v20 = vadd.f32 %v709_v18, %v680_v16  ;;  %v733_v21 = vadd.f32 %v732_v19, %v680_v16 }
 0x584   :  { %v737_v22 = vmax.f32 %v710_v20, 0.0  ;;  %v738_v24 = vmax.f32 %v733_v21, 0.0 }
 0x586   :  { %761 = vrot.lane.b32.xlu2 %v737_v22, %s1610_s10  ;;  %765 = vrot.lane.b32.xlu0 %v738_v24, %s1610_s10 }
 0x587   :  { %749 = vrot.lane.b32.xlu1 %v738_v24, %s1611_s29 }
 0x589   :  { %v879_v59 = vpop.f32.mrf.mxu0  ;;  %v902_v60 = vpop.f32.mrf.mxu1 }
 0x58e   :  { %745 = vrot.lane.b32.xlu0 %v737_v22, %s1611_s29  ;;  %763 = vrot.lane.b32.xlu2 %v736_v27, %s1610_s10 }
 0x58f   :  { %782 = vperm.xlu1 %1578, %v742_v28  }
 0x591   :  { %v882_v18 = vpop.f32.mrf.mxu0  ;;  %v905_v19 = vpop.f32.mrf.mxu1 }
 0x596   :  { %747 = vrot.lane.b32.xlu0 %v736_v27, %s1611_s29  ;;  %743 = vrot.lane.b32.xlu2 %v735_v15, %s1611_s29 }
 0x597   :  { %848 = vperm.xlu1 %1578, %v844_v29   ;;  %v915_v29 = vld [vmem:[%s2692_s20 + $0x8] sm:$0xff] }
 0x59e   :  { %853 = vperm.xlu0 %1579, %v845_v30   ;;  %777 = vperm.xlu2 %1577, %v741_v31   ;;  %v914_v30 = vld [vmem:[%s2692_s20] sm:$0xff] }
 0x5e0   :  { %v762_v32 = vpop.permute.xlu2 %761 }
 0x5e8   :  { %v764_v41 = vpop.permute.xlu2 %763 }
 0x5f0   :  { %v760_v35 = vpop.permute.xlu1 %759  ;;  %v744_v50 = vpop.permute.xlu2 %743 }
 0x5f1   :  { %v767_v42 = vsel %vm2828_vm14, %v760_v35, %v764_v41  ;;  %v769_v43 = vsel %vm2829_vm1, %v764_v41, %v760_v35  ;;  %vm2721_vm14 = vcmask 392192  }
 0x5f8   :  { %v766_v36 = vpop.permute.xlu0 %765  ;;  %v778_v61 = vpop.permute.xlu2 %777 }
 0x5f9   :  { %v768_v37 = vsel %vm2826_vm2, %v762_v32, %v766_v36  ;;  %v770_v38 = vsel %vm2827_vm4, %v766_v36, %v762_v32  ;;  %v750_v44 = vpop.permute.xlu1 %749  ;;  %vm2830_vm2 = vcmp.lt.s32.totalorder %v1811_v17, 1 }
 0x5fa   :  { %1491 = vmatpush.msk.msrb.mxu2 %vm1870_vm11, %v768_v37  ;;  %1497 = vmatpush.msk.msrb.mxu3 %vm1874_vm3, %v770_v38  ;;  %vm2831_vm4 = vmmov %vm2830_vm2 }
 0x5fb   :  { %vm2832_vm1 = vmmov %vm2830_vm2 }
 0x5fc   :  { %1492 = vmatpush.msk.msrb.mxu2 %vm1870_vm11, %v767_v42  ;;  %1498 = vmatpush.msk.msrb.mxu3 %vm1874_vm3, %v769_v43 }
 0x5fe   :  { %804 = vmatpush.msrb.mxu2 %v737_v22  ;;  %827 = vmatpush.msrb.mxu3 %v738_v24 }
 0x600   :  { %v746_v47 = vpop.permute.xlu0 %745  ;;  %805 = vmatpush.msrb.mxu2 %v735_v15  ;;  %828 = vmatpush.msrb.mxu3 %v736_v27 }
 0x601   :  { %v752_v48 = vsel %vm2830_vm2, %v746_v47, %v750_v44  ;;  %v754_v49 = vsel %vm2831_vm4, %v750_v44, %v746_v47  ;;  %vm2833_vm2 = vmmov %vm2832_vm1  ;;  %v783_v56 = vpop.permute.xlu1 %782  ;;  %vm2834_vm4 = vcmp.lt.s32.totalorder %v1811_v17, 124 }
 0x602   :  { %1493 = vmatpush.msk.msrb.mxu2 %vm1891_vm12, %v754_v49  ;;  %1499 = vmatpush.msk.msrb.mxu3 %vm1895_vm10, %v752_v48 }
 0x608   :  { %v748_v51 = vpop.permute.xlu0 %747 }
 0x609   :  { %v751_v53 = vsel %vm2832_vm1, %v744_v50, %v748_v51  ;;  %v753_v54 = vsel %vm2833_vm2, %v748_v51, %v744_v50  ;;  %v849_v62 = vpop.permute.xlu1 %848  ;;  %vm2835_vm1 = vmmov %vm2834_vm4  ;;  %vm2836_vm2 = vnez %v2741_v25 }
 0x60a   :  { %1494 = vmatpush.msk.msrb.mxu2 %vm1891_vm12, %v753_v54  ;;  %1500 = vmatpush.msk.msrb.mxu3 %vm1895_vm10, %v751_v53  ;;  %v880_v7 = vadd.f32 %v879_v59, %v849_v62  ;;  %v903_v8 = vadd.f32 %v902_v60, %v849_v62  ;;  %vm2838_vm9 = vmmov %vm2835_vm1 }
 0x60b   :  { %1495 = vmatmul.msk.f32.vlgmr.msrb.gmra.mxu2 %vm2721_vm14, %v739_v52  ;;  %1501 = vmatmul.msk.f32.vlgmr.msrb.gmra.mxu3 %vm2721_vm14, %v739_v52 }
 0x610   :  { %v854_v20 = vpop.permute.xlu0 %853 }
 0x611   :  { %v883_v24 = vadd.f32 %v882_v18, %v854_v20  ;;  %v906_v26 = vadd.f32 %v905_v19, %v854_v20 }
 0x613   :  { %1496 = vmatmul.msk.f32.gmra.mxu2 %vm2721_vm14, %v740_v55  ;;  %1502 = vmatmul.msk.f32.gmra.mxu3 %vm2721_vm14, %v740_v55  ;;  %vm2837_vm14 = vmmov %vm2835_vm1 }
 0x68e   :  { %v809_v63 = vpop.f32.mrf.mxu2  ;;  %v832_v3 = vpop.f32.mrf.mxu3 }
 0x68f   :  { %v810_v2 = vadd.f32 %v809_v63, %v778_v61  ;;  %v833_v6 = vadd.f32 %v832_v3, %v778_v61 }
 0x691   :  { %v838_v11 = vmax.f32 %v810_v2, 0.0  ;;  %v839_v0 = vmax.f32 %v833_v6, 0.0 }
 0x693   :  { %v2305_v1 = vadd.f32 %v880_v7, %v838_v11  ;;  %v2307_v12 = vadd.f32 %v903_v8, %v839_v0 }
 0x695   :  { %1000 = vrot.lane.b32.xlu0 %v2307_v12, %s1607_s30  ;;  %1016 = vrot.lane.b32.xlu2 %v2307_v12, %s1608_s9 }
 0x696   :  { %1012 = vrot.lane.b32.xlu1 %v2305_v1, %s1608_s9  ;;  %v812_v13 = vpop.f32.mrf.mxu2  ;;  %v835_v14 = vpop.f32.mrf.mxu3 }
 0x697   :  { %v813_v15 = vadd.f32 %v812_v13, %v783_v56  ;;  %v836_v16 = vadd.f32 %v835_v14, %v783_v56 }
 0x699   :  { %v840_v21 = vmax.f32 %v813_v15, 0.0  ;;  %v841_v22 = vmax.f32 %v836_v16, 0.0 }
 0x69b   :  { %v2333_v27 = vadd.f32 %v883_v24, %v840_v21  ;;  %v2335_v28 = vadd.f32 %v906_v26, %v841_v22 }
 0x69d   :  { %980 = vrot.lane.b32.xlu0 %v2305_v1, %s1609_s5  ;;  %996 = vrot.lane.b32.xlu2 %v2305_v1, %s1607_s30 }
 0x69e   :  { %984 = vrot.lane.b32.xlu1 %v2307_v12, %s1609_s5 }
 0x6a5   :  { %952 = vrot.lane.b32.xlu0 %v2307_v12, %s1611_s29  ;;  %968 = vrot.lane.b32.xlu2 %v2307_v12, %s1610_s10 }
 0x6a6   :  { %964 = vrot.lane.b32.xlu1 %v2305_v1, %s1610_s10 }
 0x6ad   :  { %932 = vrot.lane.b32.xlu0 %v2305_v1, %s1612_s1  ;;  %948 = vrot.lane.b32.xlu2 %v2305_v1, %s1611_s29 }
 0x6ae   :  { %936 = vrot.lane.b32.xlu1 %v2307_v12, %s1612_s1 }
 0x6b5   :  { %1018 = vrot.lane.b32.xlu0 %v2335_v28, %s1608_s9  ;;  %1014 = vrot.lane.b32.xlu2 %v2333_v27, %s1608_s9 }
 0x6b6   :  { %1002 = vrot.lane.b32.xlu1 %v2335_v28, %s1607_s30 }
 0x6bd   :  { %998 = vrot.lane.b32.xlu0 %v2333_v27, %s1607_s30  ;;  %986 = vrot.lane.b32.xlu2 %v2335_v28, %s1609_s5 }
 0x6be   :  { %982 = vrot.lane.b32.xlu1 %v2333_v27, %s1609_s5 }
 0x6c5   :  { %970 = vrot.lane.b32.xlu0 %v2335_v28, %s1610_s10  ;;  %966 = vrot.lane.b32.xlu2 %v2333_v27, %s1610_s10 }
 0x6c6   :  { %954 = vrot.lane.b32.xlu1 %v2335_v28, %s1611_s29 }
 0x6cd   :  { %950 = vrot.lane.b32.xlu0 %v2333_v27, %s1611_s29  ;;  %938 = vrot.lane.b32.xlu2 %v2335_v28, %s1612_s1 }
 0x6ce   :  { %934 = vrot.lane.b32.xlu1 %v2333_v27, %s1612_s1 }
 0x6d5   :  { %922 = vrot.lane.b32.xlu0 %v2335_v28, %s1613_s6  ;;  %918 = vrot.lane.b32.xlu2 %v2333_v27, %s1613_s6 }
 0x6d6   :  { %916 = vrot.lane.b32.xlu1 %v2305_v1, %s1613_s6 }
 0x6dd   :  { %1035 = vperm.xlu0 %1579, %v915_v29   ;;  %920 = vrot.lane.b32.xlu2 %v2307_v12, %s1613_s6  ;;  %s1615_s6 = smov [#allocation2]  }
 0x6de   :  { %1030 = vperm.xlu1 %1578, %v914_v30   ;;  %s1408_s4 = sshll.u32 %s1615_s6, 4  ;;  %s1409_s4 = int_to_ptr.vmem [resolvable:$true] %s1408_s4 }
 0x6ef   :  { %v1017_v31 = vpop.permute.xlu2 %1016 }
 0x6f7   :  { %v997_v32 = vpop.permute.xlu2 %996 }
 0x6ff   :  { %v969_v35 = vpop.permute.xlu2 %968 }
 0x707   :  { %v1001_v36 = vpop.permute.xlu0 %1000  ;;  %v949_v38 = vpop.permute.xlu2 %948 }
 0x708   :  { %v1013_v37 = vpop.permute.xlu1 %1012 }
 0x709   :  { %v1020_v55 = vsel %vm2837_vm14, %v1013_v37, %v1017_v31  ;;  %v1022_v56 = vsel %vm2838_vm9, %v1017_v31, %v1013_v37  ;;  %vm2841_vm14 = vnez %v2743_v33  ;;  %vm2842_vm9 = vnez %v2745_v34  ;;  %v913_v37 = vld [vmem:[%s2691_s19 + $0x8] sm:$0xff] }
 0x70f   :  { %v981_v41 = vpop.permute.xlu0 %980  ;;  %v1015_v43 = vpop.permute.xlu2 %1014 }
 0x710   :  { %v985_v42 = vpop.permute.xlu1 %984 }
 0x717   :  { %v953_v44 = vpop.permute.xlu0 %952  ;;  %v987_v50 = vpop.permute.xlu2 %986 }
 0x718   :  { %v965_v47 = vpop.permute.xlu1 %964 }
 0x71f   :  { %v2375_v48 = vpop.permute.xlu0 %932  ;;  %v967_v59 = vpop.permute.xlu2 %966 }
 0x720   :  { %v2377_v49 = vpop.permute.xlu1 %936 }
 0x727   :  { %v1019_v51 = vpop.permute.xlu0 %1018  ;;  %v939_v6 = vpop.permute.xlu2 %938 }
 0x728   :  { %v1021_v52 = vsel %vm2834_vm4, %v1015_v43, %v1019_v51  ;;  %v1023_v53 = vsel %vm2835_vm1, %v1019_v51, %v1015_v43  ;;  %v1003_v54 = vpop.permute.xlu1 %1002  ;;  %vm2839_vm4 = vcmp.lt.s32.totalorder %v1811_v17, 125 }
 0x729   :  { %1507 = vmatpush.msk.msra.mxu2 %vm1816_vm13, %v1021_v52  ;;  %1521 = vmatpush.msk.msra.mxu3 %vm2836_vm2, %v1023_v53  ;;  %vm2840_vm1 = vmmov %vm2839_vm4 }
 0x72a   :  { %vm2843_vm8 = vmmov %vm2840_vm1 }
 0x72b   :  { %1508 = vmatpush.msk.msra.mxu2 %vm1816_vm13, %v1020_v55  ;;  %1522 = vmatpush.msk.msra.mxu3 %vm2836_vm2, %v1022_v56  ;;  %v1004_v23 = vsel %vm2843_vm8, %v997_v32, %v1001_v36  ;;  %vm2844_vm13 = vmmov %vm2840_vm1  ;;  %vm2845_vm2 = vcmp.lt.s32.totalorder %v1811_v17, 126  ;;  %v1090_v55 = vld [vmem:[%s2694_s22] sm:$0xff] }
 0x72c   :  { %v1006_v25 = vsel %vm2844_vm13, %v1001_v36, %v997_v32  ;;  %vm2847_vm8 = vmmov %vm2845_vm2  ;;  %v912_v32 = vld [vmem:[%s2691_s19] sm:$0xff] }
 0x72d   :  { %v988_v33 = vsel %vm2847_vm8, %v981_v41, %v985_v42 }
 0x72f   :  { %v999_v60 = vpop.permute.xlu0 %998  ;;  %v919_v15 = vpop.permute.xlu2 %918 }
 0x730   :  { %v1005_v61 = vsel %vm2839_vm4, %v999_v60, %v1003_v54  ;;  %v1007_v62 = vsel %vm2840_vm1, %v1003_v54, %v999_v60  ;;  %v983_v63 = vpop.permute.xlu1 %982  ;;  %vm2846_vm4 = vmmov %vm2845_vm2  ;;  %v1091_v54 = vld [vmem:[%s2694_s22 + $0x8] sm:$0xff] }
 0x731   :  { %1509 = vmatpush.msk.msra.mxu2 %vm2841_vm14, %v1005_v61  ;;  %1523 = vmatpush.msk.msra.mxu3 %vm2842_vm9, %v1007_v62  ;;  %v989_v3 = vsel %vm2845_vm2, %v983_v63, %v987_v50  ;;  %v991_v2 = vsel %vm2846_vm4, %v987_v50, %v983_v63  ;;  %vm2848_vm1 = vmmov %vm2845_vm2  ;;  %vm2853_vm4 = vcmp.lt.s32.totalorder %v1811_v17, 1 }
 0x732   :  { %v990_v34 = vsel %vm2848_vm1, %v985_v42, %v981_v41  ;;  %vm2854_vm8 = vmmov %vm2853_vm4 }
 0x733   :  { %1510 = vmatpush.msk.msra.mxu2 %vm2841_vm14, %v1004_v23  ;;  %1524 = vmatpush.msk.msra.mxu3 %vm2842_vm9, %v1006_v25  ;;  %vm2849_vm14 = vcmp.lt.s32.totalorder %v1811_v17, 127  ;;  %vm2855_vm1 = vmmov %vm2853_vm4 }
 0x734   :  { %vm2850_vm9 = vmmov %vm2849_vm14  ;;  %v956_v21 = vsel %vm2855_vm1, %v949_v38, %v953_v44 }
 0x735   :  { %1511 = vmatpush.msk.msra.mxu2 %vm1848_vm5, %v989_v3  ;;  %1525 = vmatpush.msk.msra.mxu3 %vm1852_vm6, %v991_v2  ;;  %vm2851_vm13 = vmmov %vm2850_vm9 }
 0x736   :  { %v972_v13 = vsel %vm2851_vm13, %v965_v47, %v969_v35  ;;  %vm2852_vm2 = vmmov %vm2850_vm9 }
 0x737   :  { %v971_v7 = vpop.permute.xlu0 %970  ;;  %1512 = vmatpush.msk.msra.mxu2 %vm1848_vm5, %v988_v33  ;;  %1526 = vmatpush.msk.msra.mxu3 %vm1852_vm6, %v990_v34  ;;  %v974_v14 = vsel %vm2852_vm2, %v969_v35, %v965_v47  ;;  %v921_v31 = vpop.permute.xlu2 %920 }
 0x738   :  { %v973_v8 = vsel %vm2849_vm14, %v967_v59, %v971_v7  ;;  %v975_v11 = vsel %vm2850_vm9, %v971_v7, %v967_v59  ;;  %v955_v0 = vpop.permute.xlu1 %954  ;;  %vm2856_vm14 = vmmov %vm2855_vm1  ;;  %vm2857_vm9 = vcmp.lt.s32.totalorder %v1811_v17, 2 }
 0x739   :  { %1513 = vmatpush.msk.msra.mxu2 %vm1870_vm11, %v973_v8  ;;  %1527 = vmatpush.msk.msra.mxu3 %vm1874_vm3, %v975_v11  ;;  %vm2858_vm13 = vmmov %vm2857_vm9 }
 0x73a   :  { %vm2859_vm2 = vmmov %vm2857_vm9 }
 0x73b   :  { %1514 = vmatpush.msk.msra.mxu2 %vm1870_vm11, %v972_v13  ;;  %1528 = vmatpush.msk.msra.mxu3 %vm1874_vm3, %v974_v14  ;;  %v940_v24 = vsel %vm2859_vm2, %v2375_v48, %v2377_v49 }
 0x73d   :  { %1046 = vmatpush.msra.mxu2 %v2333_v27  ;;  %1069 = vmatpush.msra.mxu3 %v2335_v28 }
 0x73f   :  { %v951_v16 = vpop.permute.xlu0 %950  ;;  %1047 = vmatpush.msra.mxu2 %v2305_v1  ;;  %1070 = vmatpush.msra.mxu3 %v2307_v12  ;;  %v958_v1 = vsel %vm2856_vm14, %v953_v44, %v949_v38  ;;  %vm2863_vm14 = vnez %v2765_v10 }
 0x740   :  { %v957_v18 = vsel %vm2853_vm4, %v951_v16, %v955_v0  ;;  %v959_v19 = vsel %vm2854_vm8, %v955_v0, %v951_v16  ;;  %v935_v20 = vpop.permute.xlu1 %934  ;;  %vm2860_vm4 = vmmov %vm2859_vm2  ;;  %vm2861_vm8 = vcmp.lt.s32.totalorder %v1811_v17, 3 }
 0x741   :  { %1515 = vmatpush.msk.msra.mxu2 %vm1891_vm12, %v959_v19  ;;  %1529 = vmatpush.msk.msra.mxu3 %vm1895_vm10, %v957_v18  ;;  %v941_v12 = vsel %vm2857_vm9, %v935_v20, %v939_v6  ;;  %v943_v22 = vsel %vm2858_vm13, %v939_v6, %v935_v20  ;;  %v942_v26 = vsel %vm2860_vm4, %v2377_v49, %v2375_v48  ;;  %vm2862_vm1 = vmmov %vm2861_vm8 }
 0x742   :  { %vm2864_vm9 = vmmov %vm2862_vm1 }
 0x743   :  { %1516 = vmatpush.msk.msra.mxu2 %vm1891_vm12, %v958_v1  ;;  %1530 = vmatpush.msk.msra.mxu3 %vm1895_vm10, %v956_v21  ;;  %vm2865_vm13 = vmmov %vm2862_vm1 }
 0x745   :  { %1517 = vmatpush.msk.msra.mxu2 %vm1905_vm0, %v943_v22  ;;  %1531 = vmatpush.msk.msra.mxu3 %vm1909_vm7, %v941_v12 }
 0x747   :  { %v923_v27 = vpop.permute.xlu0 %922  ;;  %1518 = vmatpush.msk.msra.mxu2 %vm1905_vm0, %v942_v26  ;;  %1532 = vmatpush.msk.msra.mxu3 %vm1909_vm7, %v940_v24  ;;  %v1088_v24 = vld [vmem:[%s2693_s21] sm:$0xff] }
 0x748   :  { %v925_v28 = vsel %vm2861_vm8, %v919_v15, %v923_v27  ;;  %v927_v29 = vsel %vm2862_vm1, %v923_v27, %v919_v15  ;;  %v917_v30 = vpop.permute.xlu1 %916  ;;  %vm2870_vm1 = vcmp.lt.s32.totalorder %v1811_v17, 127 }
 0x749   :  { %1519 = vmatpush.msk.msra.mxu2 %vm2800_vm15, %v927_v29  ;;  %1533 = vmatpush.msk.msra.mxu3 %vm2863_vm14, %v925_v28  ;;  %v924_v35 = vsel %vm2864_vm9, %v917_v30, %v921_v31  ;;  %v926_v36 = vsel %vm2865_vm13, %v921_v31, %v917_v30  ;;  %vm2874_vm9 = vcmp.lt.s32.totalorder %v1811_v17, 1  ;;  %v1089_v28 = vld [vmem:[%s2693_s21 + $0x8] sm:$0xff] }
 0x74a   :  { %vm2875_vm13 = vmmov %vm2874_vm9 }
 0x74b   :  { %1520 = vmatpush.msk.msra.mxu2 %vm2800_vm15, %v926_v36  ;;  %1534 = vmatpush.msk.msra.mxu3 %vm2863_vm14, %v924_v35  ;;  %vm2866_vm15 = vcmp.lt.s32.totalorder %v1811_v17, 126  ;;  %vm2871_vm14 = vmmov %vm2870_vm1 }
 0x74c   :  { %1054 = vmatmul.f32.vlgmr.msra.gmra.mxu2 %v912_v32  ;;  %1077 = vmatmul.f32.vlgmr.msra.gmra.mxu3 %v912_v32  ;;  %vm2867_vm2 = vmmov %vm2866_vm15 }
 0x74d   :  { %vm2868_vm4 = vmmov %vm2867_vm2 }
 0x74e   :  { %vm2869_vm8 = vmmov %vm2867_vm2 }
 0x74f   :  { %v1036_v9 = vpop.permute.xlu0 %1035 }
 0x750   :  { %v1031_v38 = vpop.permute.xlu1 %1030 }
 0x754   :  { %1057 = vmatmul.f32.gmra.mxu2 %v913_v37  ;;  %1080 = vmatmul.f32.gmra.mxu3 %v913_v37 }
 0x7cf   :  { %v1055_v41 = vpop.f32.mrf.mxu2  ;;  %v1078_v42 = vpop.f32.mrf.mxu3 }
 0x7d0   :  { %v1056_v43 = vadd.f32 %v1055_v41, %v1031_v38  ;;  %v1079_v44 = vadd.f32 %v1078_v42, %v1031_v38 }
 0x7d2   :  { %v1084_v47 = vmax.f32 %v1056_v43, 0.0  ;;  %v1085_v48 = vmax.f32 %v1079_v44, 0.0 }
 0x7d4   :  { %1128 = vrot.lane.b32.xlu0 %v1085_v48, %s1610_s10  ;;  %1144 = vrot.lane.b32.xlu2 %v1085_v48, %s1609_s5 }
 0x7d5   :  { %1140 = vrot.lane.b32.xlu1 %v1084_v47, %s1609_s5 }
 0x7d7   :  { %v1081_v10 = vpop.f32.mrf.mxu3  ;;  %v1058_v51 = vpop.f32.mrf.mxu2 }
 0x7d8   :  { %v1082_v49 = vadd.f32 %v1081_v10, %v1036_v9  ;;  %v1059_v52 = vadd.f32 %v1058_v51, %v1036_v9 }
 0x7da   :  { %v1087_v50 = vmax.f32 %v1082_v49, 0.0  ;;  %v1086_v53 = vmax.f32 %v1059_v52, 0.0 }
 0x7dc   :  { %1146 = vrot.lane.b32.xlu0 %v1087_v50, %s1609_s5  ;;  %1124 = vrot.lane.b32.xlu2 %v1084_v47, %s1610_s10 }
 0x7dd   :  { %1112 = vrot.lane.b32.xlu1 %v1085_v48, %s1611_s29 }
 0x7e4   :  { %1126 = vrot.lane.b32.xlu0 %v1086_v53, %s1610_s10  ;;  %1142 = vrot.lane.b32.xlu2 %v1086_v53, %s1609_s5 }
 0x7e5   :  { %1130 = vrot.lane.b32.xlu1 %v1087_v50, %s1610_s10 }
 0x7ec   :  { %1108 = vrot.lane.b32.xlu0 %v1084_v47, %s1611_s29  ;;  %1114 = vrot.lane.b32.xlu2 %v1087_v50, %s1611_s29 }
 0x7ed   :  { %1110 = vrot.lane.b32.xlu1 %v1086_v53, %s1611_s29 }
 0x7f4   :  { %1098 = vrot.lane.b32.xlu0 %v1087_v50, %s1612_s1  ;;  %1094 = vrot.lane.b32.xlu2 %v1086_v53, %s1612_s1 }
 0x7f5   :  { %1092 = vrot.lane.b32.xlu1 %v1084_v47, %s1612_s1 }
 0x7fc   :  { %1163 = vperm.xlu0 %1579, %v1091_v54   ;;  %1096 = vrot.lane.b32.xlu2 %v1085_v48, %s1612_s1 }
 0x7fd   :  { %1158 = vperm.xlu1 %1578, %v1090_v55  }
 0x82e   :  { %v1145_v56 = vpop.permute.xlu2 %1144 }
 0x836   :  { %v1125_v59 = vpop.permute.xlu2 %1124 }
 0x83e   :  { %v1143_v62 = vpop.permute.xlu2 %1142 }
 0x846   :  { %v1129_v60 = vpop.permute.xlu0 %1128  ;;  %v1115_v33 = vpop.permute.xlu2 %1114 }
 0x847   :  { %v1141_v61 = vpop.permute.xlu1 %1140 }
 0x848   :  { %v1148_v2 = vsel %vm2868_vm4, %v1141_v61, %v1145_v56  ;;  %v1150_v6 = vsel %vm2869_vm8, %v1145_v56, %v1141_v61  ;;  %vm2878_vm4 = vcmp.lt.s32.totalorder %v1811_v17, 2  ;;  %v1222_v61 = vld [vmem:[%s2695_s23] sm:$0xff] }
 0x849   :  { %vm2879_vm8 = vmmov %vm2878_vm4 }
 0x84e   :  { %v1147_v63 = vpop.permute.xlu0 %1146  ;;  %v1095_v0 = vpop.permute.xlu2 %1094 }
 0x84f   :  { %v1149_v23 = vsel %vm2866_vm15, %v1143_v62, %v1147_v63  ;;  %v1151_v25 = vsel %vm2867_vm2, %v1147_v63, %v1143_v62  ;;  %v1113_v3 = vpop.permute.xlu1 %1112  ;;  %vm2876_vm15 = vmmov %vm2874_vm9 }
 0x850   :  { %1535 = vmatpush.msk.msra.mxu0 %vm1848_vm5, %v1149_v23  ;;  %1545 = vmatpush.msk.msra.mxu1 %vm1852_vm6, %v1151_v25  ;;  %vm2877_vm2 = vmmov %vm2874_vm9  ;;  %v1223_v23 = vld [vmem:[%s2695_s23 + $0x8] sm:$0xff] }
 0x852   :  { %1536 = vmatpush.msk.msra.mxu0 %vm1848_vm5, %v1148_v2  ;;  %1546 = vmatpush.msk.msra.mxu1 %vm1852_vm6, %v1150_v6  ;;  %vm2872_vm5 = vmmov %vm2870_vm1 }
 0x853   :  { %v1132_v39 = vsel %vm2872_vm5, %v1125_v59, %v1129_v60  ;;  %vm2873_vm6 = vmmov %vm2870_vm1  ;;  %vm2882_vm5 = vcmask 654336  }
 0x854   :  { %v1134_v40 = vsel %vm2873_vm6, %v1129_v60, %v1125_v59  ;;  %vm2883_vm6 = vmmov %vm2882_vm5 }
 0x856   :  { %v1127_v34 = vpop.permute.xlu0 %1126  ;;  %v1097_v22 = vpop.permute.xlu2 %1096 }
 0x857   :  { %v1131_v7 = vpop.permute.xlu1 %1130 }
 0x858   :  { %v1133_v8 = vsel %vm2870_vm1, %v1127_v34, %v1131_v7  ;;  %v1135_v11 = vsel %vm2871_vm14, %v1131_v7, %v1127_v34  ;;  %vm2880_vm1 = vmmov %vm2878_vm4 }
 0x859   :  { %1537 = vmatpush.msk.msra.mxu0 %vm1870_vm11, %v1133_v8  ;;  %1547 = vmatpush.msk.msra.mxu1 %vm1874_vm3, %v1135_v11  ;;  %vm2881_vm14 = vmmov %vm2880_vm1 }
 0x85b   :  { %1538 = vmatpush.msk.msra.mxu0 %vm1870_vm11, %v1132_v39  ;;  %1548 = vmatpush.msk.msra.mxu1 %vm1874_vm3, %v1134_v40 }
 0x85d   :  { %1182 = vmatpush.msra.mxu0 %v1086_v53  ;;  %1205 = vmatpush.msra.mxu1 %v1087_v50 }
 0x85e   :  { %v1109_v13 = vpop.permute.xlu0 %1108 }
 0x85f   :  { %1183 = vmatpush.msra.mxu0 %v1084_v47  ;;  %1206 = vmatpush.msra.mxu1 %v1085_v48  ;;  %v1111_v14 = vpop.permute.xlu1 %1110  ;;  %v1116_v18 = vsel %vm2876_vm15, %v1109_v13, %v1113_v3  ;;  %v1118_v19 = vsel %vm2877_vm2, %v1113_v3, %v1109_v13  ;;  %v1225_v47 = vld [vmem:[%s2696_s24 + $0x8] sm:$0xff]  ;;  %v1224_v48 = vld [vmem:[%s2696_s24] sm:$0xff] }
 0x860   :  { %v1117_v15 = vsel %vm2874_vm9, %v1111_v14, %v1115_v33  ;;  %v1119_v16 = vsel %vm2875_vm13, %v1115_v33, %v1111_v14  ;;  %vm2884_vm9 = vmmov %vm2882_vm5  ;;  %v1325_v13 = vld [vmem:[%s2697_s25 + $0x8] sm:$0xff] }
 0x861   :  { %1539 = vmatpush.msk.msra.mxu0 %vm1891_vm12, %v1119_v16  ;;  %1549 = vmatpush.msk.msra.mxu1 %vm1895_vm10, %v1117_v15  ;;  %vm2885_vm13 = vmmov %vm2882_vm5  ;;  %v1324_v16 = vld [vmem:[%s2697_s25] sm:$0xff] }
 0x863   :  { %1540 = vmatpush.msk.msra.mxu0 %vm1891_vm12, %v1118_v19  ;;  %1550 = vmatpush.msk.msra.mxu1 %vm1895_vm10, %v1116_v18 }
 0x866   :  { %v1099_v20 = vpop.permute.xlu0 %1098 }
 0x867   :  { %v1101_v21 = vsel %vm2878_vm4, %v1095_v0, %v1099_v20  ;;  %v1103_v1 = vsel %vm2879_vm8, %v1099_v20, %v1095_v0  ;;  %v1093_v12 = vpop.permute.xlu1 %1092  ;;  %vm2890_vm4 = vcmp.lt.s32.totalorder %v1811_v17, 1 }
 0x868   :  { %1541 = vmatpush.msk.msra.mxu0 %vm1905_vm0, %v1103_v1  ;;  %1551 = vmatpush.msk.msra.mxu1 %vm1909_vm7, %v1101_v21  ;;  %v1100_v26 = vsel %vm2880_vm1, %v1093_v12, %v1097_v22  ;;  %v1102_v27 = vsel %vm2881_vm14, %v1097_v22, %v1093_v12  ;;  %vm2891_vm8 = vmmov %vm2890_vm4  ;;  %vm2894_vm1 = vcmask 392192   ;;  %v1580_v21 = vld [vmem:[%s2698_s26] ss:$0 sm:$0xff] }
 0x869   :  { %vm2895_vm14 = vmmov %vm2894_vm1 }
 0x86a   :  { %1542 = vmatpush.msk.msra.mxu0 %vm1905_vm0, %v1102_v27  ;;  %1552 = vmatpush.msk.msra.mxu1 %vm1909_vm7, %v1100_v26  ;;  %vm2886_vm0 = vcmp.lt.s32.totalorder %v1811_v17, 127  ;;  %v1327_v17 = vld [vmem:[%s2898_s3] sm:$0xf] }
 0x86b   :  { %1543 = vmatmul.msk.f32.vlgmr.msra.gmra.mxu0 %vm2882_vm5, %v1088_v24  ;;  %1553 = vmatmul.msk.f32.vlgmr.msra.gmra.mxu1 %vm2883_vm6, %v1088_v24  ;;  %vm2887_vm7 = vmmov %vm2886_vm0  ;;  %1329 = vst [vmem:[#allocation1] ss:$4 sm:$0xff] %v1327_v17 }
 0x86c   :  { %vm2888_vm15 = vmmov %vm2886_vm0 }
 0x86d   :  { %vm2889_vm2 = vmmov %vm2886_vm0 }
 0x86e   :  { %v1164_v5 = vpop.permute.xlu0 %1163  ;;  %vm2896_vm5 = vmmov %vm2894_vm1 }
 0x86f   :  { %v1159_v29 = vpop.permute.xlu1 %1158  ;;  %vm2897_vm6 = vmmov %vm2894_vm1 }
 0x872   :  { %v1330_v14 = vld.sshfl [vmem:[#allocation1] sm:$0xff pattern:$0x73625140]  ;;  %v1331_v15 = vld.sshfl [vmem:[#allocation1 + $0x8] sm:$0xff pattern:$0x73625140] }
 0x873   :  { %1544 = vmatmul.msk.f32.gmra.mxu0 %vm2884_vm9, %v1089_v28  ;;  %1554 = vmatmul.msk.f32.gmra.mxu1 %vm2885_vm13, %v1089_v28 }
 0x8e8   :  { %v1189_v30 = vpop.f32.mrf.mxu0  ;;  %v1212_v31 = vpop.f32.mrf.mxu1 }
 0x8e9   :  { %v1190_v4 = vadd.f32 %v1189_v30, %v1159_v29  ;;  %v1213_v43 = vadd.f32 %v1212_v31, %v1159_v29 }
 0x8eb   :  { %v1218_v32 = vmax.f32 %v1190_v4, 0.0  ;;  %v1219_v44 = vmax.f32 %v1213_v43, 0.0 }
 0x8ed   :  { %1242 = vrot.lane.b32.xlu1 %v1218_v32, %s1610_s10 }
 0x8f0   :  { %v1192_v35 = vpop.f32.mrf.mxu0  ;;  %v1215_v36 = vpop.f32.mrf.mxu1 }
 0x8f1   :  { %v1193_v37 = vadd.f32 %v1192_v35, %v1164_v5  ;;  %v1216_v38 = vadd.f32 %v1215_v36, %v1164_v5 }
 0x8f3   :  { %v1220_v41 = vmax.f32 %v1193_v37, 0.0  ;;  %v1221_v42 = vmax.f32 %v1216_v38, 0.0 }
 0x8f5   :  { %1244 = vrot.lane.b32.xlu2 %v1220_v41, %s1610_s10  ;;  %1248 = vrot.lane.b32.xlu0 %v1221_v42, %s1610_s10 }
 0x8f6   :  { %1232 = vrot.lane.b32.xlu1 %v1221_v42, %s1611_s29 }
 0x8fd   :  { %1228 = vrot.lane.b32.xlu0 %v1220_v41, %s1611_s29  ;;  %1246 = vrot.lane.b32.xlu2 %v1219_v44, %s1610_s10 }
 0x8fe   :  { %1265 = vperm.xlu1 %1578, %v1225_v47  }
 0x905   :  { %1230 = vrot.lane.b32.xlu0 %v1219_v44, %s1611_s29  ;;  %1226 = vrot.lane.b32.xlu2 %v1218_v32, %s1611_s29 }
 0x90d   :  { %1260 = vperm.xlu2 %1577, %v1224_v48  }
 0x94f   :  { %v1245_v9 = vpop.permute.xlu2 %1244 }
 0x957   :  { %v1247_v52 = vpop.permute.xlu2 %1246 }
 0x95f   :  { %v1243_v10 = vpop.permute.xlu1 %1242  ;;  %v1227_v45 = vpop.permute.xlu2 %1226 }
 0x960   :  { %v1250_v53 = vsel %vm2888_vm15, %v1243_v10, %v1247_v52  ;;  %v1252_v54 = vsel %vm2889_vm2, %v1247_v52, %v1243_v10 }
 0x967   :  { %v1249_v49 = vpop.permute.xlu0 %1248  ;;  %v1261_v34 = vpop.permute.xlu2 %1260 }
 0x968   :  { %v1251_v50 = vsel %vm2886_vm0, %v1245_v9, %v1249_v49  ;;  %v1253_v51 = vsel %vm2887_vm7, %v1249_v49, %v1245_v9  ;;  %v1233_v55 = vpop.permute.xlu1 %1232 }
 0x969   :  { %1555 = vmatpush.msk.msrb.mxu0 %vm1870_vm11, %v1251_v50  ;;  %1561 = vmatpush.msk.msrb.mxu1 %vm1874_vm3, %v1253_v51 }
 0x96b   :  { %1556 = vmatpush.msk.msrb.mxu0 %vm1870_vm11, %v1250_v53  ;;  %1562 = vmatpush.msk.msrb.mxu1 %vm1874_vm3, %v1252_v54  ;;  %vm2892_vm11 = vmmov %vm2890_vm4 }
 0x96c   :  { %vm2893_vm3 = vmmov %vm2890_vm4 }
 0x96d   :  { %1286 = vmatpush.msrb.mxu0 %v1220_v41  ;;  %1309 = vmatpush.msrb.mxu1 %v1221_v42 }
 0x96f   :  { %v1229_v56 = vpop.permute.xlu0 %1228  ;;  %1287 = vmatpush.msrb.mxu0 %v1218_v32  ;;  %1310 = vmatpush.msrb.mxu1 %v1219_v44 }
 0x970   :  { %v1235_v59 = vsel %vm2890_vm4, %v1229_v56, %v1233_v55  ;;  %v1237_v60 = vsel %vm2891_vm8, %v1233_v55, %v1229_v56  ;;  %v1266_v25 = vpop.permute.xlu1 %1265 }
 0x971   :  { %1557 = vmatpush.msk.msrb.mxu0 %vm1891_vm12, %v1237_v60  ;;  %1563 = vmatpush.msk.msrb.mxu1 %vm1895_vm10, %v1235_v59 }
 0x977   :  { %v1231_v46 = vpop.permute.xlu0 %1230 }
 0x978   :  { %v1234_v62 = vsel %vm2892_vm11, %v1227_v45, %v1231_v46  ;;  %v1236_v63 = vsel %vm2893_vm3, %v1231_v46, %v1227_v45 }
 0x979   :  { %1558 = vmatpush.msk.msrb.mxu0 %vm1891_vm12, %v1236_v63  ;;  %1564 = vmatpush.msk.msrb.mxu1 %vm1895_vm10, %v1234_v62  ;;  %vm1377_vm12 = vcmask 130048   ;;  %vm1401_vm10 = vcmask 17408  }
 0x97a   :  { %1559 = vmatmul.msk.f32.vlgmr.msrb.gmra.mxu0 %vm2894_vm1, %v1222_v61  ;;  %1565 = vmatmul.msk.f32.vlgmr.msrb.gmra.mxu1 %vm2895_vm14, %v1222_v61 }
 0x982   :  { %1560 = vmatmul.msk.f32.gmra.mxu0 %vm2896_vm5, %v1223_v23  ;;  %1566 = vmatmul.msk.f32.gmra.mxu1 %vm2897_vm6, %v1223_v23 }
 0x9f7   :  { %v1291_v57 = vpop.f32.mrf.mxu0  ;;  %v1314_v58 = vpop.f32.mrf.mxu1 }
 0x9f8   :  { %v1292_v7 = vadd.f32 %v1291_v57, %v1261_v34  ;;  %v1315_v8 = vadd.f32 %v1314_v58, %v1261_v34 }
 0x9fa   :  { %v1320_v40 = vmax.f32 %v1292_v7, 0.0  ;;  %v1321_v0 = vmax.f32 %v1315_v8, 0.0 }
 0x9ff   :  { %v1294_v3 = vpop.f32.mrf.mxu0  ;;  %v1317_v2 = vpop.f32.mrf.mxu1 }
 0xa00   :  { %v1295_v6 = vadd.f32 %v1294_v3, %v1266_v25  ;;  %v1318_v33 = vadd.f32 %v1317_v2, %v1266_v25 }
 0xa02   :  { %v1322_v11 = vmax.f32 %v1295_v6, 0.0  ;;  %v1323_v39 = vmax.f32 %v1318_v33, 0.0 }
 0xa04   :  { %1348 = vmatpush.xpose.msrb.mxu2 %v1322_v11  ;;  %1368 = vmatpush.xpose.msrb.mxu3 %v1323_v39 }
 0xa08   :  { %1349 = vmatpush.xpose.msrb.mxu2 %v1320_v40  ;;  %1369 = vmatpush.xpose.msrb.mxu3 %v1321_v0 }
 0xa0b   :  { %1350 = vmatmul.f32.vlgmr.msrb.gmra.mxu2 %v1330_v14  ;;  %1370 = vmatmul.f32.vlgmr.msrb.gmra.mxu3 %v1331_v15 }
 0xa0c   :  { %1395 = vmatpush.msra.mxu2 %v1325_v13 }
 0xa0e   :  { %1396 = vmatpush.msra.mxu2 %v1324_v16 }
 0xa8e   :  { %v1351_v18 = vpop.f32.mrf.mxu2  ;;  %v1371_v19 = vpop.f32.mrf.mxu3 }
 0xa8f   :  { %v1372_v20 = vadd.f32 %v1371_v19, %v1351_v18 }
 0xa91   :  { %1567 = vmatmul.msk.f32.vlgmr.msra.gmra.mxu2 %vm1377_vm12, %v1372_v20 }
 0xb14   :  { %v1398_v1 = vpop.f32.mrf.mxu2 }
 0xb15   :  { %v1399_v12 = vadd.f32 %v1580_v21, %v1398_v1 }
 0xb17   :  { %1402 = vst.msk [vmem:[#allocation2] sm:$0x3] %vm1401_vm10, %v1399_v12 }
 0xb18   :  { %1413 = dma.vmem_to_hbm [thread:$0]  %s1409_s4, 32, %s1411_s17, [#allocation3]  }
 0xb19   :  { %1605 = dma.done.wait [#allocation3], 32  }
 0xb1a   :  { %1606 = vsyncadd [#allocation3], 4294967264 }
 0xb1b   :  { %1418 = vsyncpa [#allocation3], 1 }

</bundles_post_ra>
